<compile_context>
chip_gen: v7x
topology: tpu7x:2x2x1
jax: 0.10.0
libtpu: 0.0.40
codegen_flags: <defaults>
</compile_context>

<pallas_src>
import functools

import jax
import jax.numpy as jnp
from jax.experimental import pallas as pl
from jax.experimental.pallas import tpu as pltpu

# Logical dims; hidden dims are padded to lane multiples (padding lives only in weights).
D_IN = 784               # 28*28 — kept un-padded in HBM (6*128 + 16 lanes)
H, H_P = 400, 512        # 4 * 128
Z, Z_P = 20, 128         # 1 * 128


def _round_up(v, m):
    return ((v + m - 1) // m) * m


def _hw_defaults():
    """(tb_max, vmem_limit_bytes, force_two_grid_steps) chosen from the local TPU.

    128 MiB-VMEM parts (v5e/v6e, one TensorCore): big tile + raised scoped-VMEM limit.
    Small-VMEM parts (v7x: 64 MiB per TC, 2 TCs): keep TB <= 512 and force >= 2 grid
    steps so the "parallel" batch axis gives the second TensorCore work.
    Conservative fallback if the query fails: the v7x-like settings (safe everywhere).
    """
    tb_max, vmem_limit, force_two = 512, None, True
    try:
        info = pltpu.get_tpu_info()
        vmem = int(getattr(info, "vmem_capacity_bytes", 0) or 0)
        if vmem >= (96 << 20):
            tb_max, vmem_limit, force_two = 1024, 64 << 20, False
    except Exception:
        pass
    return tb_max, vmem_limit, force_two


_TB_MAX, _VMEM_LIMIT_BYTES, _FORCE_TWO_STEPS = _hw_defaults()


# ----------------------------------------------------------------------------
# Kernel: one batch tile through the full VAE (4 MXU matmuls, f32 accumulation).
# ----------------------------------------------------------------------------
def _vae_fwd_kernel(x_ref,
                    w1_ref, b1_ref,
                    w2_ref, b2_ref,
                    w3_ref, b3_ref,
                    w4_ref, b4_ref,
                    recon_ref, mu_ref):
    # x tile arrives in bf16 (MXU-native); accumulation is f32; elementwise tail is f32
    # (v5e VPU/EUP have no bf16 path, so the f32 tail is right everywhere).
    x = x_ref[...]                                                       # (TB, 784) bf16

    # encode
    h1 = jnp.dot(x, w1_ref[...], preferred_element_type=jnp.float32) + b1_ref[...]
    h1 = jnp.maximum(h1, 0.0)                                            # ReLU (f32)
    mu = jnp.dot(h1.astype(jnp.bfloat16), w2_ref[...],
                 preferred_element_type=jnp.float32) + b2_ref[...]       # (TB, 128)

    # decode
    h3 = jnp.dot(mu.astype(jnp.bfloat16), w3_ref[...],
                 preferred_element_type=jnp.float32) + b3_ref[...]
    h3 = jnp.maximum(h3, 0.0)                                            # ReLU (f32)
    logits = jnp.dot(h3.astype(jnp.bfloat16), w4_ref[...],
                     preferred_element_type=jnp.float32) + b4_ref[...]   # (TB, 784)

    recon_ref[...] = jax.nn.sigmoid(logits).astype(recon_ref.dtype)
    mu_ref[...] = mu[:, :Z]                                              # (TB, 20) f32


# ----------------------------------------------------------------------------
# One-time parameter preparation: pad hidden dims, cast weights to bf16.
# ----------------------------------------------------------------------------
def prepare_params(params):
    (w1, b1), (w2, b2), (w3, b3), (w4, b4) = params   # weights (in, out) f32, biases (1, out)

    def pad2(a, rows, cols):
        return jnp.pad(a, ((0, rows - a.shape[0]), (0, cols - a.shape[1])))

    w1p = pad2(w1, D_IN, H_P).astype(jnp.bfloat16)    # (784, 512)
    b1p = pad2(b1, 1, H_P)                            # (1, 512) f32
    w2p = pad2(w2, H_P, Z_P).astype(jnp.bfloat16)     # (512, 128)
    b2p = pad2(b2, 1, Z_P)
    w3p = pad2(w3, Z_P, H_P).astype(jnp.bfloat16)     # (128, 512)
    b3p = pad2(b3, 1, H_P)
    w4p = pad2(w4, H_P, D_IN).astype(jnp.bfloat16)    # (512, 784) — no lane padding
    b4p = pad2(b4, 1, D_IN)                           # (1, 784)
    return (w1p, b1p, w2p, b2p, w3p, b3p, w4p, b4p)


@functools.partial(jax.jit, static_argnames=("recon_dtype",))
def vae_forward(x, prepared, *, recon_dtype=jnp.float32):
    """x: (B,1,28,28) or (B,784). Returns (recon (B,784) recon_dtype, mu (B,20) f32)."""
    w1p, b1p, w2p, b2p, w3p, b3p, w4p, b4p = prepared

    # torch: x.view(-1, 784); cast straight to bf16 (the matmul input dtype) so the x
    # tile DMA is half-width.  If the caller already holds bf16 data this is a no-op,
    # and when row padding is needed the cast+pad fuse into a single XLA pass.
    x2d = x.reshape(-1, D_IN).astype(jnp.bfloat16)
    B = x2d.shape[0]

    # Batch tile: as large as the hardware budget allows, multiple of 16 (bf16 sublane
    # packing); on 2-TC parts additionally capped so the grid has >= 2 parallel steps.
    TB = min(_TB_MAX, _round_up(B, 16))
    if _FORCE_TWO_STEPS and B > 16:
        TB = min(TB, _round_up(pl.cdiv(B, 2), 16))
    Bp = pl.cdiv(B, TB) * TB
    if Bp != B:
        x2d = jnp.pad(x2d, ((0, Bp - B), (0, 0)))     # row-only pad
    grid = (Bp // TB,)

    def resident(shape):   # full-array block, same index every step -> stays in VMEM
        return pl.BlockSpec(shape, lambda i: (0, 0))

    flops = 2 * Bp * (D_IN * H_P + H_P * Z_P + Z_P * H_P + H_P * D_IN)
    bytes_accessed = (
        Bp * D_IN * 2                                   # x (bf16)
        + Bp * D_IN * jnp.dtype(recon_dtype).itemsize   # recon
        + Bp * Z * 4                                    # mu
        + sum(int(a.size) * a.dtype.itemsize
              for a in (w1p, b1p, w2p, b2p, w3p, b3p, w4p, b4p)))

    recon_p, mu_p = pl.pallas_call(
        _vae_fwd_kernel,
        grid=grid,
        out_shape=(
            jax.ShapeDtypeStruct((Bp, D_IN), recon_dtype),
            jax.ShapeDtypeStruct((Bp, Z), jnp.float32),
        ),
        in_specs=[
            pl.BlockSpec((TB, D_IN), lambda i: (i, 0)),     # x tile (bf16, full 784 lanes)
            resident((D_IN, H_P)), resident((1, H_P)),      # fc1
            resident((H_P, Z_P)),  resident((1, Z_P)),      # fc2
            resident((Z_P, H_P)),  resident((1, H_P)),      # fc3
            resident((H_P, D_IN)), resident((1, D_IN)),     # fc4
        ],
        out_specs=(
            pl.BlockSpec((TB, D_IN), lambda i: (i, 0)),     # recon tile (full 784 lanes)
            pl.BlockSpec((TB, Z), lambda i: (i, 0)),        # mu tile (full 20 lanes)
        ),
        compiler_params=pltpu.CompilerParams(
            dimension_semantics=("parallel",),              # megacore sharding on 2-TC parts
            vmem_limit_bytes=_VMEM_LIMIT_BYTES),
        cost_estimate=pl.CostEstimate(
            flops=flops,
            transcendentals=Bp * D_IN,                      # sigmoid exp
            bytes_accessed=bytes_accessed),
    )(x2d, w1p, b1p, w2p, b2p, w3p, b3p, w4p, b4p)

    if Bp != B:            # row slice only when batch padding was actually added
        recon_p = recon_p[:B]
        mu_p = mu_p[:B]
    return recon_p, mu_p


# ----------------------------------------------------------------------------
# Deterministic PyTorch nn.Linear-style init; weights stored pre-transposed (in, out).
# ----------------------------------------------------------------------------
def init_params(key):
    dims = [(D_IN, H), (H, Z), (Z, H), (H, D_IN)]
    params = []
    for (fan_in, fan_out) in dims:
        key, kw, kb = jax.random.split(key, 3)
        bound = 1.0 / (fan_in ** 0.5)
        w_t = jax.random.uniform(kw, (fan_in, fan_out), jnp.float32, -bound, bound)
        b = jax.random.uniform(kb, (1, fan_out), jnp.float32, -bound, bound)
        params.append((w_t, b))
    return tuple(params)


def _reference_forward(x, params, matmul_dtype=jnp.float32):
    (w1, b1), (w2, b2), (w3, b3), (w4, b4) = params
    x2d = x.reshape(-1, D_IN).astype(jnp.float32)

    def mm(a, w):
        return jnp.dot(a.astype(matmul_dtype), w.astype(matmul_dtype),
                       preferred_element_type=jnp.float32)

    h1 = jax.nn.relu(mm(x2d, w1) + b1)
    mu = mm(h1, w2) + b2
    h3 = jax.nn.relu(mm(mu, w3) + b3)
    recon = jax.nn.sigmoid(mm(h3, w4) + b4)
    return recon, mu


if __name__ == "__main__":
    key = jax.random.PRNGKey(0)
    key_p, key_x, key_xb = jax.random.split(key, 3)

    params = init_params(key_p)
    prepared = prepare_params(params)

    # Small MNIST-like batch, NCHW like the PyTorch module: (B=2, 1, 28, 28).
    x = jax.random.uniform(key_x, (2, 1, 28, 28), jnp.float32)
    recon, mu = vae_forward(x, prepared)
    jax.block_until_ready((recon, mu))
    assert recon.shape == (2, D_IN) and recon.dtype == jnp.float32
    assert mu.shape == (2, Z) and mu.dtype == jnp.float32

    # Tight check vs a matching-precision reference (bf16 matmul inputs, f32 accum).
    recon_bf, mu_bf = _reference_forward(x, params, matmul_dtype=jnp.bfloat16)
    assert jnp.allclose(recon, recon_bf, atol=1e-3, rtol=1e-3)
    assert jnp.allclose(mu, mu_bf, atol=1e-3, rtol=1e-3)

    # Loose semantic check vs the full-f32 reference (bf16 weight quantization noise).
    recon_f32, mu_f32 = _reference_forward(x, params)
    assert jnp.allclose(recon, recon_f32, atol=5e-2)
    assert jnp.allclose(mu, mu_f32, atol=5e-2)

    # Exercise the multi-tile / ragged-batch path (B=600).
    xb = jax.random.uniform(key_xb, (600, 1, 28, 28), jnp.float32)
    recon_b, mu_b = vae_forward(xb, prepared)
    jax.block_until_ready((recon_b, mu_b))
    recon_b_ref, mu_b_ref = _reference_forward(xb, params, matmul_dtype=jnp.bfloat16)
    assert recon_b.shape == (600, D_IN) and mu_b.shape == (600, Z)
    assert jnp.allclose(recon_b, recon_b_ref, atol=1e-3, rtol=1e-3)
    assert jnp.allclose(mu_b, mu_b_ref, atol=1e-3, rtol=1e-3)

    # Optional bf16 recon output (halves writeback on memory-bound parts); only the
    # final sigmoid quantization differs from the f32-output path.
    recon_h, mu_h = vae_forward(x, prepared, recon_dtype=jnp.bfloat16)
    jax.block_until_ready((recon_h, mu_h))
    assert recon_h.dtype == jnp.bfloat16
    assert jnp.allclose(recon_h.astype(jnp.float32), recon, atol=5e-3)
    assert jnp.allclose(mu_h, mu_bf, atol=1e-3, rtol=1e-3)

    print("KERNEL_OK")
</pallas_src>

<mosaic_0001>
module attributes {stable_mosaic.version = 11 : i64} {
  func.func @_vae_fwd_kernel(%arg0: i32, %arg1: memref<16x784xbf16, #tpu.memory_space<vmem>>, %arg2: memref<784x512xbf16, #tpu.memory_space<vmem>>, %arg3: memref<1x512xf32, #tpu.memory_space<vmem>>, %arg4: memref<512x128xbf16, #tpu.memory_space<vmem>>, %arg5: memref<1x128xf32, #tpu.memory_space<vmem>>, %arg6: memref<128x512xbf16, #tpu.memory_space<vmem>>, %arg7: memref<1x512xf32, #tpu.memory_space<vmem>>, %arg8: memref<512x784xbf16, #tpu.memory_space<vmem>>, %arg9: memref<1x784xf32, #tpu.memory_space<vmem>>, %arg10: memref<16x784xf32, #tpu.memory_space<vmem>>, %arg11: memref<16x20xf32, #tpu.memory_space<vmem>>) attributes {dimension_semantics = [#tpu.dimension_semantics<parallel>], iteration_bounds = array<i64: 1>, scalar_prefetch = 0 : i64, scratch_operands = 0 : i64, tpu.core_type = #tpu.core_type<tc>, window_params = [{transform_indices = @transform_0, window_bounds = array<i64: 16, 784>}, {pipeline_mode = #tpu.pipeline_mode<synchronous>, transform_indices = @transform_1, window_bounds = array<i64: 784, 512>}, {pipeline_mode = #tpu.pipeline_mode<synchronous>, transform_indices = @transform_2, window_bounds = array<i64: 1, 512>}, {pipeline_mode = #tpu.pipeline_mode<synchronous>, transform_indices = @transform_3, window_bounds = array<i64: 512, 128>}, {pipeline_mode = #tpu.pipeline_mode<synchronous>, transform_indices = @transform_4, window_bounds = array<i64: 1, 128>}, {pipeline_mode = #tpu.pipeline_mode<synchronous>, transform_indices = @transform_5, window_bounds = array<i64: 128, 512>}, {pipeline_mode = #tpu.pipeline_mode<synchronous>, transform_indices = @transform_6, window_bounds = array<i64: 1, 512>}, {pipeline_mode = #tpu.pipeline_mode<synchronous>, transform_indices = @transform_7, window_bounds = array<i64: 512, 784>}, {pipeline_mode = #tpu.pipeline_mode<synchronous>, transform_indices = @transform_8, window_bounds = array<i64: 1, 784>}, {transform_indices = @transform_9, window_bounds = array<i64: 16, 784>}, {transform_indices = @transform_10, window_bounds = array<i64: 16, 20>}]} {
    %c0 = arith.constant 0 : index
    %c0_0 = arith.constant 0 : index
    %0 = vector.load %arg1[%c0, %c0_0] : memref<16x784xbf16, #tpu.memory_space<vmem>>, vector<16x784xbf16>
    %c0_1 = arith.constant 0 : index
    %c0_2 = arith.constant 0 : index
    %1 = vector.load %arg2[%c0_1, %c0_2] : memref<784x512xbf16, #tpu.memory_space<vmem>>, vector<784x512xbf16>
    %cst = arith.constant dense<0.000000e+00> : vector<16x512xf32>
    %2 = tpu.matmul %0, %1, %cst {dimension_numbers = #tpu.dot_dimension_numbers<[1], [0], [0], [1], [0, 0, 1, 1], [], []>} : vector<16x784xbf16>, vector<784x512xbf16>, vector<16x512xf32> -> vector<16x512xf32>
    %c0_3 = arith.constant 0 : index
    %c0_4 = arith.constant 0 : index
    %3 = vector.load %arg3[%c0_3, %c0_4] : memref<1x512xf32, #tpu.memory_space<vmem>>, vector<1x512xf32>
    %4 = vector.broadcast %3 : vector<1x512xf32> to vector<16x512xf32>
    %5 = arith.addf %2, %4 : vector<16x512xf32>
    %cst_5 = arith.constant 0.000000e+00 : f32
    %6 = vector.broadcast %cst_5 : f32 to vector<16x512xf32>
    %7 = arith.maximumf %5, %6 : vector<16x512xf32>
    %8 = arith.truncf %7 : vector<16x512xf32> to vector<16x512xbf16>
    %c0_6 = arith.constant 0 : index
    %c0_7 = arith.constant 0 : index
    %9 = vector.load %arg4[%c0_6, %c0_7] : memref<512x128xbf16, #tpu.memory_space<vmem>>, vector<512x128xbf16>
    %cst_8 = arith.constant dense<0.000000e+00> : vector<16x128xf32>
    %10 = tpu.matmul %8, %9, %cst_8 {dimension_numbers = #tpu.dot_dimension_numbers<[1], [0], [0], [1], [0, 0, 1, 1], [], []>} : vector<16x512xbf16>, vector<512x128xbf16>, vector<16x128xf32> -> vector<16x128xf32>
    %c0_9 = arith.constant 0 : index
    %c0_10 = arith.constant 0 : index
    %11 = vector.load %arg5[%c0_9, %c0_10] : memref<1x128xf32, #tpu.memory_space<vmem>>, vector<1x128xf32>
    %12 = vector.broadcast %11 : vector<1x128xf32> to vector<16x128xf32>
    %13 = arith.addf %10, %12 : vector<16x128xf32>
    %14 = arith.truncf %13 : vector<16x128xf32> to vector<16x128xbf16>
    %c0_11 = arith.constant 0 : index
    %c0_12 = arith.constant 0 : index
    %15 = vector.load %arg6[%c0_11, %c0_12] : memref<128x512xbf16, #tpu.memory_space<vmem>>, vector<128x512xbf16>
    %cst_13 = arith.constant dense<0.000000e+00> : vector<16x512xf32>
    %16 = tpu.matmul %14, %15, %cst_13 {dimension_numbers = #tpu.dot_dimension_numbers<[1], [0], [0], [1], [0, 0, 1, 1], [], []>} : vector<16x128xbf16>, vector<128x512xbf16>, vector<16x512xf32> -> vector<16x512xf32>
    %c0_14 = arith.constant 0 : index
    %c0_15 = arith.constant 0 : index
    %17 = vector.load %arg7[%c0_14, %c0_15] : memref<1x512xf32, #tpu.memory_space<vmem>>, vector<1x512xf32>
    %18 = vector.broadcast %17 : vector<1x512xf32> to vector<16x512xf32>
    %19 = arith.addf %16, %18 : vector<16x512xf32>
    %cst_16 = arith.constant 0.000000e+00 : f32
    %20 = vector.broadcast %cst_16 : f32 to vector<16x512xf32>
    %21 = arith.maximumf %19, %20 : vector<16x512xf32>
    %22 = arith.truncf %21 : vector<16x512xf32> to vector<16x512xbf16>
    %c0_17 = arith.constant 0 : index
    %c0_18 = arith.constant 0 : index
    %23 = vector.load %arg8[%c0_17, %c0_18] : memref<512x784xbf16, #tpu.memory_space<vmem>>, vector<512x784xbf16>
    %cst_19 = arith.constant dense<0.000000e+00> : vector<16x784xf32>
    %24 = tpu.matmul %22, %23, %cst_19 {dimension_numbers = #tpu.dot_dimension_numbers<[1], [0], [0], [1], [0, 0, 1, 1], [], []>} : vector<16x512xbf16>, vector<512x784xbf16>, vector<16x784xf32> -> vector<16x784xf32>
    %c0_20 = arith.constant 0 : index
    %c0_21 = arith.constant 0 : index
    %25 = vector.load %arg9[%c0_20, %c0_21] : memref<1x784xf32, #tpu.memory_space<vmem>>, vector<1x784xf32>
    %26 = vector.broadcast %25 : vector<1x784xf32> to vector<16x784xf32>
    %27 = arith.addf %24, %26 : vector<16x784xf32>
    %28 = arith.negf %27 : vector<16x784xf32>
    %29 = math.exp %28 : vector<16x784xf32>
    %cst_22 = arith.constant 1.000000e+00 : f32
    %30 = vector.broadcast %cst_22 : f32 to vector<16x784xf32>
    %31 = arith.addf %30, %29 : vector<16x784xf32>
    %32 = arith.divf %30, %31 : vector<16x784xf32>
    %c0_23 = arith.constant 0 : index
    %c0_24 = arith.constant 0 : index
    %33 = vector.load %arg10[%c0_23, %c0_24] : memref<16x784xf32, #tpu.memory_space<vmem>>, vector<16x784xf32>
    tpu.vector_store %arg10[%c0_23, %c0_24], %32 {strides = array<i32>} : memref<16x784xf32, #tpu.memory_space<vmem>>, vector<16x784xf32>,
    %34 = vector.extract_strided_slice %13 {offsets = [0, 0], sizes = [16, 20], strides = [1, 1]} : vector<16x128xf32> to vector<16x20xf32>
    %c0_25 = arith.constant 0 : index
    %c0_26 = arith.constant 0 : index
    %35 = vector.load %arg11[%c0_25, %c0_26] : memref<16x20xf32, #tpu.memory_space<vmem>>, vector<16x20xf32>
    tpu.vector_store %arg11[%c0_25, %c0_26], %34 {strides = array<i32>} : memref<16x20xf32, #tpu.memory_space<vmem>>, vector<16x20xf32>,
    return
  }
  func.func @transform_0(%arg0: i32) -> (i32, i32) {
    %c0_i32 = arith.constant 0 : i32
    %c0_i32_0 = arith.constant 0 : i32
    return %arg0, %c0_i32 : i32, i32
  }
  func.func @transform_1(%arg0: i32) -> (i32, i32) {
    %c0_i32 = arith.constant 0 : i32
    %c0_i32_0 = arith.constant 0 : i32
    %c0_i32_1 = arith.constant 0 : i32
    return %c0_i32, %c0_i32_0 : i32, i32
  }
  func.func @transform_2(%arg0: i32) -> (i32, i32) {
    %c0_i32 = arith.constant 0 : i32
    %c0_i32_0 = arith.constant 0 : i32
    %c0_i32_1 = arith.constant 0 : i32
    return %c0_i32, %c0_i32_0 : i32, i32
  }
  func.func @transform_3(%arg0: i32) -> (i32, i32) {
    %c0_i32 = arith.constant 0 : i32
    %c0_i32_0 = arith.constant 0 : i32
    %c0_i32_1 = arith.constant 0 : i32
    return %c0_i32, %c0_i32_0 : i32, i32
  }
  func.func @transform_4(%arg0: i32) -> (i32, i32) {
    %c0_i32 = arith.constant 0 : i32
    %c0_i32_0 = arith.constant 0 : i32
    %c0_i32_1 = arith.constant 0 : i32
    return %c0_i32, %c0_i32_0 : i32, i32
  }
  func.func @transform_5(%arg0: i32) -> (i32, i32) {
    %c0_i32 = arith.constant 0 : i32
    %c0_i32_0 = arith.constant 0 : i32
    %c0_i32_1 = arith.constant 0 : i32
    return %c0_i32, %c0_i32_0 : i32, i32
  }
  func.func @transform_6(%arg0: i32) -> (i32, i32) {
    %c0_i32 = arith.constant 0 : i32
    %c0_i32_0 = arith.constant 0 : i32
    %c0_i32_1 = arith.constant 0 : i32
    return %c0_i32, %c0_i32_0 : i32, i32
  }
  func.func @transform_7(%arg0: i32) -> (i32, i32) {
    %c0_i32 = arith.constant 0 : i32
    %c0_i32_0 = arith.constant 0 : i32
    %c0_i32_1 = arith.constant 0 : i32
    return %c0_i32, %c0_i32_0 : i32, i32
  }
  func.func @transform_8(%arg0: i32) -> (i32, i32) {
    %c0_i32 = arith.constant 0 : i32
    %c0_i32_0 = arith.constant 0 : i32
    %c0_i32_1 = arith.constant 0 : i32
    return %c0_i32, %c0_i32_0 : i32, i32
  }
  func.func @transform_9(%arg0: i32) -> (i32, i32) {
    %c0_i32 = arith.constant 0 : i32
    %c0_i32_0 = arith.constant 0 : i32
    return %arg0, %c0_i32 : i32, i32
  }
  func.func @transform_10(%arg0: i32) -> (i32, i32) {
    %c0_i32 = arith.constant 0 : i32
    %c0_i32_0 = arith.constant 0 : i32
    return %arg0, %c0_i32 : i32, i32
  }
}

</mosaic_0001>

<bundles_post_ra>
// kernel: vae_forward.1
= control target key start
LH: loop header
LB: loop body
LE: loop exit
PB: predicated region body
PF: predicated region fallthrough
CT: control target
= control target key end

     0   :  { %vm1276_vm0 = vcmask 130048   ;;  %vm4177_vm1 = vcmask 162816   ;;  %s7260_s1 = inlined_call_operand.vmem [shape: bf16[784,512], index: 1, kind: input, shape index: {}]   ;;  %s7261_s0 = inlined_call_operand.vmem [shape: bf16[16,784], index: 0, kind: input, shape index: {}]   ;;  %s7262_s3 = inlined_call_operand.vmem [shape: bf16[512,128], index: 3, kind: input, shape index: {}]   ;;  %s7263_s2 = inlined_call_operand.vmem [shape: f32[1,512], index: 2, kind: input, shape index: {}]   ;;  %s7264_s5 = inlined_call_operand.vmem [shape: bf16[128,512], index: 5, kind: input, shape index: {}]   ;;  %s7265_s7 = inlined_call_operand.vmem [shape: bf16[512,784], index: 7, kind: input, shape index: {}]   ;;  %s7266_s4 = inlined_call_operand.vmem [shape: f32[1,128], index: 4, kind: input, shape index: {}]   ;;  %s7267_s10 = inlined_call_operand.vmem [shape: f32[16,20], index: 10, kind: output, shape index: {1}]   ;;  %s7268_s6 = inlined_call_operand.vmem [shape: f32[1,512], index: 6, kind: input, shape index: {}]   ;;  %s7269_s8 = inlined_call_operand.vmem [shape: f32[1,784], index: 8, kind: input, shape index: {}]   ;;  %s7270_s9 = inlined_call_operand.vmem [shape: f32[16,784], index: 9, kind: output, shape index: {0}]  }
   0x1   :  { %v4841_v0 = vld [vmem:[%s7260_s1 + $0x4] ss:$16 sps:$4 sm:$0xff]   ;;  %v4843_v1 = vld [vmem:[%s7260_s1 + $0xc] ss:$16 sps:$4 sm:$0xff]   ;;  %v4845_v2 = vld [vmem:[%s7260_s1] ss:$16 sps:$4 sm:$0xff]  }
   0x2   :  { %1280 = vmatprep.subr.bf16.mxu0 %v4841_v0  ;;  %v4846_v3 = vld [vmem:[%s7260_s1 + $0x8] ss:$16 sps:$4 sm:$0xff]   ;;  %1452 = vmatprep.subr.bf16.mxu1 %v4843_v1  ;;  %v4847_v4 = vld [vmem:[%s7260_s1 + $0x24] ss:$16 sps:$4 sm:$0xff]   ;;  %v4849_v5 = vld [vmem:[%s7260_s1 + $0x2c] ss:$16 sps:$4 sm:$0xff]  }
   0x3   :  { %1281 = vmatpush1.bf16.msra.mxu0 %v4845_v2  ;;  %1453 = vmatpush1.bf16.msra.mxu1 %v4846_v3  ;;  %v4851_v6 = vld [vmem:[%s7260_s1 + $0x20] ss:$16 sps:$4 sm:$0xff]   ;;  %v4852_v7 = vld [vmem:[%s7260_s1 + $0x28] ss:$16 sps:$4 sm:$0xff]   ;;  %v4853_v8 = vld [vmem:[%s7260_s1 + $0x44] ss:$16 sps:$4 sm:$0xff]  }
   0x4   :  { %1282 = vmatprep.subr.bf16.mxu0 %v4847_v4  ;;  %1454 = vmatprep.subr.bf16.mxu1 %v4849_v5  ;;  %v4855_v9 = vld [vmem:[%s7260_s1 + $0x4c] ss:$16 sps:$4 sm:$0xff]   ;;  %v4857_v10 = vld [vmem:[%s7260_s1 + $0x40] ss:$16 sps:$4 sm:$0xff]   ;;  %v4858_v11 = vld [vmem:[%s7260_s1 + $0x48] ss:$16 sps:$4 sm:$0xff]  }
   0x5   :  { %v4859_v12 = vld [vmem:[%s7260_s1 + $0x64] ss:$16 sps:$4 sm:$0xff]   ;;  %v4861_v13 = vld [vmem:[%s7260_s1 + $0x6c] ss:$16 sps:$4 sm:$0xff]   ;;  %v4863_v14 = vld [vmem:[%s7260_s1 + $0x60] ss:$16 sps:$4 sm:$0xff]  }
   0x6   :  { %v4864_v15 = vld [vmem:[%s7260_s1 + $0x68] ss:$16 sps:$4 sm:$0xff]   ;;  %v4865_v16 = vld [vmem:[%s7260_s1 + $0x84] ss:$16 sps:$4 sm:$0xff]   ;;  %v4867_v17 = vld [vmem:[%s7260_s1 + $0x8c] ss:$16 sps:$4 sm:$0xff]  }
   0x7   :  { %1283 = vmatpush1.bf16.msra.mxu0 %v4851_v6  ;;  %1455 = vmatpush1.bf16.msra.mxu1 %v4852_v7  ;;  %v4869_v18 = vld [vmem:[%s7260_s1 + $0x80] ss:$16 sps:$4 sm:$0xff]   ;;  %v4870_v19 = vld [vmem:[%s7260_s1 + $0x88] ss:$16 sps:$4 sm:$0xff]   ;;  %v4871_v20 = vld [vmem:[%s7260_s1 + $0xa4] ss:$16 sps:$4 sm:$0xff]  }
   0x8   :  { %1284 = vmatprep.subr.bf16.mxu0 %v4853_v8  ;;  %1456 = vmatprep.subr.bf16.mxu1 %v4855_v9  ;;  %v4873_v21 = vld [vmem:[%s7260_s1 + $0xac] ss:$16 sps:$4 sm:$0xff]   ;;  %v4875_v22 = vld [vmem:[%s7260_s1 + $0xa0] ss:$16 sps:$4 sm:$0xff]   ;;  %v4876_v23 = vld [vmem:[%s7260_s1 + $0xa8] ss:$16 sps:$4 sm:$0xff]  }
   0x9   :  { %v4877_v24 = vld [vmem:[%s7260_s1 + $0xc4] ss:$16 sps:$4 sm:$0xff]   ;;  %v4879_v25 = vld [vmem:[%s7260_s1 + $0xcc] ss:$16 sps:$4 sm:$0xff]   ;;  %v4881_v26 = vld [vmem:[%s7260_s1 + $0xc0] ss:$16 sps:$4 sm:$0xff]  }
   0xa   :  { %v4882_v27 = vld [vmem:[%s7260_s1 + $0xc8] ss:$16 sps:$4 sm:$0xff]   ;;  %v4883_v28 = vld [vmem:[%s7260_s1 + $0xe4] ss:$16 sps:$4 sm:$0xff]   ;;  %v4885_v29 = vld [vmem:[%s7260_s1 + $0xec] ss:$16 sps:$4 sm:$0xff]  }
   0xb   :  { %1285 = vmatpush1.bf16.msra.mxu0 %v4857_v10  ;;  %1457 = vmatpush1.bf16.msra.mxu1 %v4858_v11  ;;  %v4887_v30 = vld [vmem:[%s7260_s1 + $0xe0] ss:$16 sps:$4 sm:$0xff]   ;;  %v4888_v31 = vld [vmem:[%s7260_s1 + $0xe8] ss:$16 sps:$4 sm:$0xff]   ;;  %v4889_v32 = vld [vmem:[%s7260_s1 + $0x104] ss:$16 sps:$4 sm:$0xff]  }
   0xc   :  { %1286 = vmatprep.subr.bf16.mxu0 %v4859_v12  ;;  %1458 = vmatprep.subr.bf16.mxu1 %v4861_v13  ;;  %v4891_v33 = vld [vmem:[%s7260_s1 + $0x10c] ss:$16 sps:$4 sm:$0xff]   ;;  %v4893_v34 = vld [vmem:[%s7260_s1 + $0x100] ss:$16 sps:$4 sm:$0xff]   ;;  %v4894_v35 = vld [vmem:[%s7260_s1 + $0x108] ss:$16 sps:$4 sm:$0xff]  }
   0xd   :  { %v4895_v36 = vld [vmem:[%s7260_s1 + $0x124] ss:$16 sps:$4 sm:$0xff]   ;;  %v4897_v37 = vld [vmem:[%s7260_s1 + $0x12c] ss:$16 sps:$4 sm:$0xff]   ;;  %v4899_v38 = vld [vmem:[%s7260_s1 + $0x120] ss:$16 sps:$4 sm:$0xff]  }
   0xe   :  { %v4900_v39 = vld [vmem:[%s7260_s1 + $0x128] ss:$16 sps:$4 sm:$0xff]   ;;  %v4901_v40 = vld [vmem:[%s7260_s1 + $0x144] ss:$16 sps:$4 sm:$0xff]   ;;  %v4903_v41 = vld [vmem:[%s7260_s1 + $0x14c] ss:$16 sps:$4 sm:$0xff]  }
   0xf   :  { %1287 = vmatpush1.bf16.msra.mxu0 %v4863_v14  ;;  %1459 = vmatpush1.bf16.msra.mxu1 %v4864_v15  ;;  %v4905_v42 = vld [vmem:[%s7260_s1 + $0x140] ss:$16 sps:$4 sm:$0xff]   ;;  %v4906_v43 = vld [vmem:[%s7260_s1 + $0x148] ss:$16 sps:$4 sm:$0xff]   ;;  %v4907_v44 = vld [vmem:[%s7260_s1 + $0x164] ss:$16 sps:$4 sm:$0xff]  }
  0x10   :  { %1288 = vmatprep.subr.bf16.mxu0 %v4865_v16  ;;  %1460 = vmatprep.subr.bf16.mxu1 %v4867_v17  ;;  %v4909_v45 = vld [vmem:[%s7260_s1 + $0x16c] ss:$16 sps:$4 sm:$0xff]   ;;  %v4911_v46 = vld [vmem:[%s7260_s1 + $0x160] ss:$16 sps:$4 sm:$0xff]   ;;  %v4912_v47 = vld [vmem:[%s7260_s1 + $0x168] ss:$16 sps:$4 sm:$0xff]  }
  0x11   :  { %v4939_v48 = vld [vmem:[%s7261_s0 + $0x4] ss:$28 sps:$4 sm:$0xff]   ;;  %v4915_v50 = vld [vmem:[%s7260_s1 + $0x18c] ss:$16 sps:$4 sm:$0xff]   ;;  %v4918_v52 = vld [vmem:[%s7260_s1 + $0x188] ss:$16 sps:$4 sm:$0xff]  }
  0x12   :  { %v4913_v49 = vld [vmem:[%s7260_s1 + $0x184] ss:$16 sps:$4 sm:$0xff]   ;;  %1312 = vmatprep.mubr.bf16.mxu0 %v4939_v48  ;;  %1484 = vmatprep.mubr.bf16.mxu1 %v4939_v48  ;;  %v4917_v51 = vld [vmem:[%s7260_s1 + $0x180] ss:$16 sps:$4 sm:$0xff]   ;;  %v4921_v54 = vld [vmem:[%s7260_s1 + $0x1ac] ss:$16 sps:$4 sm:$0xff]  }
  0x13   :  { %1289 = vmatpush1.bf16.msra.mxu0 %v4869_v18  ;;  %1461 = vmatpush1.bf16.msra.mxu1 %v4870_v19  ;;  %v4919_v53 = vld [vmem:[%s7260_s1 + $0x1a4] ss:$16 sps:$4 sm:$0xff]   ;;  %v4923_v55 = vld [vmem:[%s7260_s1 + $0x1a0] ss:$16 sps:$4 sm:$0xff]   ;;  %v4924_v56 = vld [vmem:[%s7260_s1 + $0x1a8] ss:$16 sps:$4 sm:$0xff]  }
  0x14   :  { %1290 = vmatprep.subr.bf16.mxu0 %v4871_v20  ;;  %1462 = vmatprep.subr.bf16.mxu1 %v4873_v21  ;;  %v4925_v57 = vld [vmem:[%s7260_s1 + $0x1c4] ss:$16 sps:$4 sm:$0xff]   ;;  %v4927_v58 = vld [vmem:[%s7260_s1 + $0x1cc] ss:$16 sps:$4 sm:$0xff]   ;;  %v4929_v59 = vld [vmem:[%s7260_s1 + $0x1c0] ss:$16 sps:$4 sm:$0xff]  }
  0x15   :  { %v4930_v60 = vld [vmem:[%s7260_s1 + $0x1c8] ss:$16 sps:$4 sm:$0xff]   ;;  %v4931_v61 = vld [vmem:[%s7260_s1 + $0x1e4] ss:$16 sps:$4 sm:$0xff]   ;;  %v4933_v62 = vld [vmem:[%s7260_s1 + $0x1ec] ss:$16 sps:$4 sm:$0xff]  }
  0x16   :  { %v4935_v63 = vld [vmem:[%s7260_s1 + $0x1e0] ss:$16 sps:$4 sm:$0xff]   ;;  %v4936_v0 = vld [vmem:[%s7260_s1 + $0x1e8] ss:$16 sps:$4 sm:$0xff]   ;;  %v4942_v1 = vld [vmem:[%s7260_s1 + $0x204] ss:$16 sps:$4 sm:$0xff]  }
  0x17   :  { %1291 = vmatpush1.bf16.msra.mxu0 %v4875_v22  ;;  %1463 = vmatpush1.bf16.msra.mxu1 %v4876_v23  ;;  %v4945_v2 = vld [vmem:[%s7260_s1 + $0x20c] ss:$16 sps:$4 sm:$0xff]   ;;  %v4940_v4 = vld [vmem:[%s7260_s1 + $0x200] ss:$16 sps:$4 sm:$0xff]   ;;  %v4943_v5 = vld [vmem:[%s7260_s1 + $0x208] ss:$16 sps:$4 sm:$0xff]  }
  0x18   :  { %1292 = vmatprep.subr.bf16.mxu0 %v4877_v24  ;;  %1464 = vmatprep.subr.bf16.mxu1 %v4879_v25  ;;  %v4937_v3 = vld [vmem:[%s7261_s0] ss:$28 sps:$4 sm:$0xff]   ;;  %v4948_v6 = vld [vmem:[%s7260_s1 + $0x224] ss:$16 sps:$4 sm:$0xff]   ;;  %v4949_v9 = vld [vmem:[%s7260_s1 + $0x228] ss:$16 sps:$4 sm:$0xff]  }
  0x19   :  { %v4951_v7 = vld [vmem:[%s7260_s1 + $0x22c] ss:$16 sps:$4 sm:$0xff]   ;;  %v4946_v8 = vld [vmem:[%s7260_s1 + $0x220] ss:$16 sps:$4 sm:$0xff]   ;;  %v4954_v10 = vld [vmem:[%s7260_s1 + $0x244] ss:$16 sps:$4 sm:$0xff]  }
  0x1a   :  { %v4957_v11 = vld [vmem:[%s7260_s1 + $0x24c] ss:$16 sps:$4 sm:$0xff]   ;;  %v4952_v12 = vld [vmem:[%s7260_s1 + $0x240] ss:$16 sps:$4 sm:$0xff]   ;;  %v4955_v13 = vld [vmem:[%s7260_s1 + $0x248] ss:$16 sps:$4 sm:$0xff]  }
  0x1b   :  { %1293 = vmatpush1.bf16.msra.mxu0 %v4881_v26  ;;  %1465 = vmatpush1.bf16.msra.mxu1 %v4882_v27  ;;  %v4960_v14 = vld [vmem:[%s7260_s1 + $0x264] ss:$16 sps:$4 sm:$0xff]   ;;  %v4963_v15 = vld [vmem:[%s7260_s1 + $0x26c] ss:$16 sps:$4 sm:$0xff]   ;;  %v4958_v16 = vld [vmem:[%s7260_s1 + $0x260] ss:$16 sps:$4 sm:$0xff]  }
  0x1c   :  { %1294 = vmatprep.subr.bf16.mxu0 %v4883_v28  ;;  %1466 = vmatprep.subr.bf16.mxu1 %v4885_v29  ;;  %v4961_v17 = vld [vmem:[%s7260_s1 + $0x268] ss:$16 sps:$4 sm:$0xff]   ;;  %v4966_v18 = vld [vmem:[%s7260_s1 + $0x284] ss:$16 sps:$4 sm:$0xff]   ;;  %v4969_v19 = vld [vmem:[%s7260_s1 + $0x28c] ss:$16 sps:$4 sm:$0xff]  }
  0x1d   :  { %v4964_v20 = vld [vmem:[%s7260_s1 + $0x280] ss:$16 sps:$4 sm:$0xff]   ;;  %v4967_v21 = vld [vmem:[%s7260_s1 + $0x288] ss:$16 sps:$4 sm:$0xff]   ;;  %v4972_v22 = vld [vmem:[%s7260_s1 + $0x2a4] ss:$16 sps:$4 sm:$0xff]  }
  0x1e   :  { %v4975_v23 = vld [vmem:[%s7260_s1 + $0x2ac] ss:$16 sps:$4 sm:$0xff]   ;;  %v4970_v24 = vld [vmem:[%s7260_s1 + $0x2a0] ss:$16 sps:$4 sm:$0xff]   ;;  %v4973_v25 = vld [vmem:[%s7260_s1 + $0x2a8] ss:$16 sps:$4 sm:$0xff]  }
  0x1f   :  { %1295 = vmatpush1.bf16.msra.mxu0 %v4887_v30  ;;  %1467 = vmatpush1.bf16.msra.mxu1 %v4888_v31  ;;  %v4978_v26 = vld [vmem:[%s7260_s1 + $0x2c4] ss:$16 sps:$4 sm:$0xff]   ;;  %v4981_v27 = vld [vmem:[%s7260_s1 + $0x2cc] ss:$16 sps:$4 sm:$0xff]   ;;  %v4976_v28 = vld [vmem:[%s7260_s1 + $0x2c0] ss:$16 sps:$4 sm:$0xff]  }
  0x20   :  { %1296 = vmatprep.subr.bf16.mxu0 %v4889_v32  ;;  %1468 = vmatprep.subr.bf16.mxu1 %v4891_v33  ;;  %v4979_v29 = vld [vmem:[%s7260_s1 + $0x2c8] ss:$16 sps:$4 sm:$0xff]   ;;  %v4984_v31 = vld [vmem:[%s7260_s1 + $0x2e4] ss:$16 sps:$4 sm:$0xff]   ;;  %v4987_v32 = vld [vmem:[%s7260_s1 + $0x2ec] ss:$16 sps:$4 sm:$0xff]  }
  0x21   :  { %v5038_v30 = vld [vmem:[%s7261_s0 + $0xc] ss:$28 sps:$4 sm:$0xff]   ;;  %v4982_v33 = vld [vmem:[%s7260_s1 + $0x2e0] ss:$16 sps:$4 sm:$0xff]  }
  0x22   :  { %v5011_v48 = vld [vmem:[%s7260_s1 + $0x36c] ss:$16 sps:$4 sm:$0xff]  }
  0x23   :  { %1297 = vmatpush1.bf16.msra.mxu0 %v4893_v34  ;;  %1469 = vmatpush1.bf16.msra.mxu1 %v4894_v35  ;;  %v4985_v34 = vld [vmem:[%s7260_s1 + $0x2e8] ss:$16 sps:$4 sm:$0xff]   ;;  %v4990_v35 = vld [vmem:[%s7260_s1 + $0x304] ss:$16 sps:$4 sm:$0xff]  }
  0x24   :  { %1298 = vmatprep.subr.bf16.mxu0 %v4895_v36  ;;  %1470 = vmatprep.subr.bf16.mxu1 %v4897_v37  ;;  %v4993_v36 = vld [vmem:[%s7260_s1 + $0x30c] ss:$16 sps:$4 sm:$0xff]   ;;  %v4988_v37 = vld [vmem:[%s7260_s1 + $0x300] ss:$16 sps:$4 sm:$0xff]  }
  0x27   :  { %1299 = vmatpush1.bf16.msra.mxu0 %v4899_v38  ;;  %1471 = vmatpush1.bf16.msra.mxu1 %v4900_v39  ;;  %v4991_v38 = vld [vmem:[%s7260_s1 + $0x308] ss:$16 sps:$4 sm:$0xff]   ;;  %v4996_v39 = vld [vmem:[%s7260_s1 + $0x324] ss:$16 sps:$4 sm:$0xff]  }
  0x28   :  { %1300 = vmatprep.subr.bf16.mxu0 %v4901_v40  ;;  %1472 = vmatprep.subr.bf16.mxu1 %v4903_v41  ;;  %v4999_v40 = vld [vmem:[%s7260_s1 + $0x32c] ss:$16 sps:$4 sm:$0xff]   ;;  %v4994_v41 = vld [vmem:[%s7260_s1 + $0x320] ss:$16 sps:$4 sm:$0xff]  }
  0x2b   :  { %1301 = vmatpush1.bf16.msra.mxu0 %v4905_v42  ;;  %1473 = vmatpush1.bf16.msra.mxu1 %v4906_v43  ;;  %v4997_v42 = vld [vmem:[%s7260_s1 + $0x328] ss:$16 sps:$4 sm:$0xff]   ;;  %v5002_v43 = vld [vmem:[%s7260_s1 + $0x344] ss:$16 sps:$4 sm:$0xff]  }
  0x2c   :  { %1302 = vmatprep.subr.bf16.mxu0 %v4907_v44  ;;  %1474 = vmatprep.subr.bf16.mxu1 %v4909_v45  ;;  %v5005_v44 = vld [vmem:[%s7260_s1 + $0x34c] ss:$16 sps:$4 sm:$0xff]   ;;  %v5000_v45 = vld [vmem:[%s7260_s1 + $0x340] ss:$16 sps:$4 sm:$0xff]  }
  0x2f   :  { %1303 = vmatpush1.bf16.msra.mxu0 %v4911_v46  ;;  %1475 = vmatpush1.bf16.msra.mxu1 %v4912_v47  ;;  %v5003_v46 = vld [vmem:[%s7260_s1 + $0x348] ss:$16 sps:$4 sm:$0xff]   ;;  %v5008_v47 = vld [vmem:[%s7260_s1 + $0x364] ss:$16 sps:$4 sm:$0xff]  }
  0x30   :  { %1304 = vmatprep.subr.bf16.mxu0 %v4913_v49  ;;  %1476 = vmatprep.subr.bf16.mxu1 %v4915_v50  ;;  %v5006_v49 = vld [vmem:[%s7260_s1 + $0x360] ss:$16 sps:$4 sm:$0xff]   ;;  %v5009_v50 = vld [vmem:[%s7260_s1 + $0x368] ss:$16 sps:$4 sm:$0xff]  }
  0x33   :  { %1305 = vmatpush1.bf16.msra.mxu0 %v4917_v51  ;;  %1477 = vmatpush1.bf16.msra.mxu1 %v4918_v52  ;;  %v5014_v51 = vld [vmem:[%s7260_s1 + $0x384] ss:$16 sps:$4 sm:$0xff]   ;;  %v5017_v52 = vld [vmem:[%s7260_s1 + $0x38c] ss:$16 sps:$4 sm:$0xff]  }
  0x34   :  { %1306 = vmatprep.subr.bf16.mxu0 %v4919_v53  ;;  %1478 = vmatprep.subr.bf16.mxu1 %v4921_v54  ;;  %v5012_v53 = vld [vmem:[%s7260_s1 + $0x380] ss:$16 sps:$4 sm:$0xff]   ;;  %v5015_v54 = vld [vmem:[%s7260_s1 + $0x388] ss:$16 sps:$4 sm:$0xff]  }
  0x37   :  { %1307 = vmatpush1.bf16.msra.mxu0 %v4923_v55  ;;  %1479 = vmatpush1.bf16.msra.mxu1 %v4924_v56  ;;  %v5020_v55 = vld [vmem:[%s7260_s1 + $0x3a4] ss:$16 sps:$4 sm:$0xff]   ;;  %v5023_v56 = vld [vmem:[%s7260_s1 + $0x3ac] ss:$16 sps:$4 sm:$0xff]  }
  0x38   :  { %1308 = vmatprep.subr.bf16.mxu0 %v4925_v57  ;;  %1480 = vmatprep.subr.bf16.mxu1 %v4927_v58  ;;  %v5018_v57 = vld [vmem:[%s7260_s1 + $0x3a0] ss:$16 sps:$4 sm:$0xff]   ;;  %v5021_v58 = vld [vmem:[%s7260_s1 + $0x3a8] ss:$16 sps:$4 sm:$0xff]  }
  0x3b   :  { %1309 = vmatpush1.bf16.msra.mxu0 %v4929_v59  ;;  %1481 = vmatpush1.bf16.msra.mxu1 %v4930_v60  ;;  %v5026_v59 = vld [vmem:[%s7260_s1 + $0x3c4] ss:$16 sps:$4 sm:$0xff]   ;;  %v5029_v60 = vld [vmem:[%s7260_s1 + $0x3cc] ss:$16 sps:$4 sm:$0xff]  }
  0x3c   :  { %1310 = vmatprep.subr.bf16.mxu0 %v4931_v61  ;;  %1482 = vmatprep.subr.bf16.mxu1 %v4933_v62  ;;  %v5024_v61 = vld [vmem:[%s7260_s1 + $0x3c0] ss:$16 sps:$4 sm:$0xff]   ;;  %v5027_v62 = vld [vmem:[%s7260_s1 + $0x3c8] ss:$16 sps:$4 sm:$0xff]  }
  0x3f   :  { %1311 = vmatpush1.bf16.msra.mxu0 %v4935_v63  ;;  %1483 = vmatpush1.bf16.msra.mxu1 %v4936_v0  ;;  %v5032_v63 = vld [vmem:[%s7260_s1 + $0x3e4] ss:$16 sps:$4 sm:$0xff]   ;;  %v5035_v0 = vld [vmem:[%s7260_s1 + $0x3ec] ss:$16 sps:$4 sm:$0xff]  }
  0x40   :  { %1323 = vmatprep.subr.bf16.mxu0 %v4942_v1  ;;  %1495 = vmatprep.subr.bf16.mxu1 %v4945_v2  ;;  %v5030_v1 = vld [vmem:[%s7260_s1 + $0x3e0] ss:$16 sps:$4 sm:$0xff]   ;;  %v5033_v2 = vld [vmem:[%s7260_s1 + $0x3e8] ss:$16 sps:$4 sm:$0xff]  }
  0x42   :  { %1313 = vmatmul.mubr.bf16.vlgmr.msra.gmra.mrb[0].mxu0 %v4937_v3  ;;  %1485 = vmatmul.mubr.bf16.vlgmr.msra.gmra.mrb[0].mxu1 %v4937_v3  ;;  %v5041_v3 = vld [vmem:[%s7260_s1 + $0x404] ss:$16 sps:$4 sm:$0xff]  }
  0x43   :  { %1324 = vmatpush1.bf16.msra.mxu0 %v4940_v4  ;;  %1496 = vmatpush1.bf16.msra.mxu1 %v4943_v5  ;;  %v5044_v4 = vld [vmem:[%s7260_s1 + $0x40c] ss:$16 sps:$4 sm:$0xff]   ;;  %v5036_v5 = vld [vmem:[%s7261_s0 + $0x8] ss:$28 sps:$4 sm:$0xff]  }
  0x44   :  { %1325 = vmatprep.subr.bf16.mxu0 %v4948_v6  ;;  %1497 = vmatprep.subr.bf16.mxu1 %v4951_v7  ;;  %v5039_v6 = vld [vmem:[%s7260_s1 + $0x400] ss:$16 sps:$4 sm:$0xff]   ;;  %v5042_v7 = vld [vmem:[%s7260_s1 + $0x408] ss:$16 sps:$4 sm:$0xff]  }
  0x45   :  { %1355 = vmatprep.mubr.bf16.mxu0 %v5038_v30  ;;  %1527 = vmatprep.mubr.bf16.mxu1 %v5038_v30  ;;  %v5080_v30 = vld [vmem:[%s7260_s1 + $0x4cc] ss:$16 sps:$4 sm:$0xff]  }
  0x47   :  { %1326 = vmatpush1.bf16.msra.mxu0 %v4946_v8  ;;  %1498 = vmatpush1.bf16.msra.mxu1 %v4949_v9  ;;  %v5047_v8 = vld [vmem:[%s7260_s1 + $0x424] ss:$16 sps:$4 sm:$0xff]   ;;  %v5050_v9 = vld [vmem:[%s7260_s1 + $0x42c] ss:$16 sps:$4 sm:$0xff]  }
  0x48   :  { %1327 = vmatprep.subr.bf16.mxu0 %v4954_v10  ;;  %1499 = vmatprep.subr.bf16.mxu1 %v4957_v11  ;;  %v5045_v10 = vld [vmem:[%s7260_s1 + $0x420] ss:$16 sps:$4 sm:$0xff]   ;;  %v5048_v11 = vld [vmem:[%s7260_s1 + $0x428] ss:$16 sps:$4 sm:$0xff]  }
  0x4b   :  { %1328 = vmatpush1.bf16.msra.mxu0 %v4952_v12  ;;  %1500 = vmatpush1.bf16.msra.mxu1 %v4955_v13  ;;  %v5137_v12 = vld [vmem:[%s7261_s0 + $0x14] ss:$28 sps:$4 sm:$0xff]  }
  0x4c   :  { %1329 = vmatprep.subr.bf16.mxu0 %v4960_v14  ;;  %1501 = vmatprep.subr.bf16.mxu1 %v4963_v15  ;;  %v5053_v13 = vld [vmem:[%s7260_s1 + $0x444] ss:$16 sps:$4 sm:$0xff]   ;;  %v5056_v14 = vld [vmem:[%s7260_s1 + $0x44c] ss:$16 sps:$4 sm:$0xff]   ;;  %v5051_v15 = vld [vmem:[%s7260_s1 + $0x440] ss:$16 sps:$4 sm:$0xff]  }
  0x4f   :  { %1330 = vmatpush1.bf16.msra.mxu0 %v4958_v16  ;;  %1502 = vmatpush1.bf16.msra.mxu1 %v4961_v17  ;;  %v5054_v16 = vld [vmem:[%s7260_s1 + $0x448] ss:$16 sps:$4 sm:$0xff]   ;;  %v5059_v17 = vld [vmem:[%s7260_s1 + $0x464] ss:$16 sps:$4 sm:$0xff]  }
  0x50   :  { %1331 = vmatprep.subr.bf16.mxu0 %v4966_v18  ;;  %1503 = vmatprep.subr.bf16.mxu1 %v4969_v19  ;;  %v5062_v18 = vld [vmem:[%s7260_s1 + $0x46c] ss:$16 sps:$4 sm:$0xff]   ;;  %v5057_v19 = vld [vmem:[%s7260_s1 + $0x460] ss:$16 sps:$4 sm:$0xff]  }
  0x53   :  { %1332 = vmatpush1.bf16.msra.mxu0 %v4964_v20  ;;  %1504 = vmatpush1.bf16.msra.mxu1 %v4967_v21  ;;  %v5060_v20 = vld [vmem:[%s7260_s1 + $0x468] ss:$16 sps:$4 sm:$0xff]   ;;  %v5065_v21 = vld [vmem:[%s7260_s1 + $0x484] ss:$16 sps:$4 sm:$0xff]  }
  0x54   :  { %1333 = vmatprep.subr.bf16.mxu0 %v4972_v22  ;;  %1505 = vmatprep.subr.bf16.mxu1 %v4975_v23  ;;  %v5068_v22 = vld [vmem:[%s7260_s1 + $0x48c] ss:$16 sps:$4 sm:$0xff]   ;;  %v5063_v23 = vld [vmem:[%s7260_s1 + $0x480] ss:$16 sps:$4 sm:$0xff]  }
  0x57   :  { %1334 = vmatpush1.bf16.msra.mxu0 %v4970_v24  ;;  %1506 = vmatpush1.bf16.msra.mxu1 %v4973_v25  ;;  %v5066_v24 = vld [vmem:[%s7260_s1 + $0x488] ss:$16 sps:$4 sm:$0xff]   ;;  %v5071_v25 = vld [vmem:[%s7260_s1 + $0x4a4] ss:$16 sps:$4 sm:$0xff]  }
  0x58   :  { %1335 = vmatprep.subr.bf16.mxu0 %v4978_v26  ;;  %1507 = vmatprep.subr.bf16.mxu1 %v4981_v27  ;;  %v5074_v26 = vld [vmem:[%s7260_s1 + $0x4ac] ss:$16 sps:$4 sm:$0xff]   ;;  %v5069_v27 = vld [vmem:[%s7260_s1 + $0x4a0] ss:$16 sps:$4 sm:$0xff]  }
  0x5b   :  { %1336 = vmatpush1.bf16.msra.mxu0 %v4976_v28  ;;  %1508 = vmatpush1.bf16.msra.mxu1 %v4979_v29  ;;  %v5072_v28 = vld [vmem:[%s7260_s1 + $0x4a8] ss:$16 sps:$4 sm:$0xff]   ;;  %v5077_v29 = vld [vmem:[%s7260_s1 + $0x4c4] ss:$16 sps:$4 sm:$0xff]  }
  0x5c   :  { %1337 = vmatprep.subr.bf16.mxu0 %v4984_v31  ;;  %1509 = vmatprep.subr.bf16.mxu1 %v4987_v32  ;;  %v5075_v31 = vld [vmem:[%s7260_s1 + $0x4c0] ss:$16 sps:$4 sm:$0xff]   ;;  %v5078_v32 = vld [vmem:[%s7260_s1 + $0x4c8] ss:$16 sps:$4 sm:$0xff]  }
  0x5f   :  { %1338 = vmatpush1.bf16.msra.mxu0 %v4982_v33  ;;  %1510 = vmatpush1.bf16.msra.mxu1 %v4985_v34  ;;  %v5083_v33 = vld [vmem:[%s7260_s1 + $0x4e4] ss:$16 sps:$4 sm:$0xff]   ;;  %v5086_v34 = vld [vmem:[%s7260_s1 + $0x4ec] ss:$16 sps:$4 sm:$0xff]  }
  0x60   :  { %1339 = vmatprep.subr.bf16.mxu0 %v4990_v35  ;;  %1511 = vmatprep.subr.bf16.mxu1 %v4993_v36  ;;  %v5081_v35 = vld [vmem:[%s7260_s1 + $0x4e0] ss:$16 sps:$4 sm:$0xff]   ;;  %v5084_v36 = vld [vmem:[%s7260_s1 + $0x4e8] ss:$16 sps:$4 sm:$0xff]  }
  0x63   :  { %1340 = vmatpush1.bf16.msra.mxu0 %v4988_v37  ;;  %1512 = vmatpush1.bf16.msra.mxu1 %v4991_v38  ;;  %v5089_v37 = vld [vmem:[%s7260_s1 + $0x504] ss:$16 sps:$4 sm:$0xff]   ;;  %v5092_v38 = vld [vmem:[%s7260_s1 + $0x50c] ss:$16 sps:$4 sm:$0xff]  }
  0x64   :  { %1341 = vmatprep.subr.bf16.mxu0 %v4996_v39  ;;  %1513 = vmatprep.subr.bf16.mxu1 %v4999_v40  ;;  %v5087_v39 = vld [vmem:[%s7260_s1 + $0x500] ss:$16 sps:$4 sm:$0xff]   ;;  %v5090_v40 = vld [vmem:[%s7260_s1 + $0x508] ss:$16 sps:$4 sm:$0xff]  }
  0x67   :  { %1342 = vmatpush1.bf16.msra.mxu0 %v4994_v41  ;;  %1514 = vmatpush1.bf16.msra.mxu1 %v4997_v42  ;;  %v5095_v41 = vld [vmem:[%s7260_s1 + $0x524] ss:$16 sps:$4 sm:$0xff]   ;;  %v5098_v42 = vld [vmem:[%s7260_s1 + $0x52c] ss:$16 sps:$4 sm:$0xff]  }
  0x68   :  { %1343 = vmatprep.subr.bf16.mxu0 %v5002_v43  ;;  %1515 = vmatprep.subr.bf16.mxu1 %v5005_v44  ;;  %v5093_v43 = vld [vmem:[%s7260_s1 + $0x520] ss:$16 sps:$4 sm:$0xff]   ;;  %v5096_v44 = vld [vmem:[%s7260_s1 + $0x528] ss:$16 sps:$4 sm:$0xff]  }
  0x6b   :  { %1344 = vmatpush1.bf16.msra.mxu0 %v5000_v45  ;;  %1516 = vmatpush1.bf16.msra.mxu1 %v5003_v46  ;;  %v5101_v45 = vld [vmem:[%s7260_s1 + $0x544] ss:$16 sps:$4 sm:$0xff]   ;;  %v5104_v46 = vld [vmem:[%s7260_s1 + $0x54c] ss:$16 sps:$4 sm:$0xff]  }
  0x6c   :  { %1345 = vmatprep.subr.bf16.mxu0 %v5008_v47  ;;  %1517 = vmatprep.subr.bf16.mxu1 %v5011_v48  ;;  %v5099_v47 = vld [vmem:[%s7260_s1 + $0x540] ss:$16 sps:$4 sm:$0xff]   ;;  %v5102_v48 = vld [vmem:[%s7260_s1 + $0x548] ss:$16 sps:$4 sm:$0xff]  }
  0x6f   :  { %1346 = vmatpush1.bf16.msra.mxu0 %v5006_v49  ;;  %1518 = vmatpush1.bf16.msra.mxu1 %v5009_v50  ;;  %v5107_v49 = vld [vmem:[%s7260_s1 + $0x564] ss:$16 sps:$4 sm:$0xff]   ;;  %v5110_v50 = vld [vmem:[%s7260_s1 + $0x56c] ss:$16 sps:$4 sm:$0xff]  }
  0x70   :  { %1347 = vmatprep.subr.bf16.mxu0 %v5014_v51  ;;  %1519 = vmatprep.subr.bf16.mxu1 %v5017_v52  ;;  %v5105_v51 = vld [vmem:[%s7260_s1 + $0x560] ss:$16 sps:$4 sm:$0xff]   ;;  %v5108_v52 = vld [vmem:[%s7260_s1 + $0x568] ss:$16 sps:$4 sm:$0xff]  }
  0x73   :  { %1348 = vmatpush1.bf16.msra.mxu0 %v5012_v53  ;;  %1520 = vmatpush1.bf16.msra.mxu1 %v5015_v54  ;;  %v5113_v53 = vld [vmem:[%s7260_s1 + $0x584] ss:$16 sps:$4 sm:$0xff]   ;;  %v5116_v54 = vld [vmem:[%s7260_s1 + $0x58c] ss:$16 sps:$4 sm:$0xff]  }
  0x74   :  { %1349 = vmatprep.subr.bf16.mxu0 %v5020_v55  ;;  %1521 = vmatprep.subr.bf16.mxu1 %v5023_v56  ;;  %v5111_v55 = vld [vmem:[%s7260_s1 + $0x580] ss:$16 sps:$4 sm:$0xff]   ;;  %v5114_v56 = vld [vmem:[%s7260_s1 + $0x588] ss:$16 sps:$4 sm:$0xff]  }
  0x77   :  { %1350 = vmatpush1.bf16.msra.mxu0 %v5018_v57  ;;  %1522 = vmatpush1.bf16.msra.mxu1 %v5021_v58  ;;  %v5119_v57 = vld [vmem:[%s7260_s1 + $0x5a4] ss:$16 sps:$4 sm:$0xff]   ;;  %v5122_v58 = vld [vmem:[%s7260_s1 + $0x5ac] ss:$16 sps:$4 sm:$0xff]  }
  0x78   :  { %1351 = vmatprep.subr.bf16.mxu0 %v5026_v59  ;;  %1523 = vmatprep.subr.bf16.mxu1 %v5029_v60  ;;  %v5117_v59 = vld [vmem:[%s7260_s1 + $0x5a0] ss:$16 sps:$4 sm:$0xff]   ;;  %v5120_v60 = vld [vmem:[%s7260_s1 + $0x5a8] ss:$16 sps:$4 sm:$0xff]  }
  0x7b   :  { %1352 = vmatpush1.bf16.msra.mxu0 %v5024_v61  ;;  %1524 = vmatpush1.bf16.msra.mxu1 %v5027_v62  ;;  %v5125_v61 = vld [vmem:[%s7260_s1 + $0x5c4] ss:$16 sps:$4 sm:$0xff]   ;;  %v5128_v62 = vld [vmem:[%s7260_s1 + $0x5cc] ss:$16 sps:$4 sm:$0xff]  }
  0x7c   :  { %1353 = vmatprep.subr.bf16.mxu0 %v5032_v63  ;;  %1525 = vmatprep.subr.bf16.mxu1 %v5035_v0  ;;  %v5123_v63 = vld [vmem:[%s7260_s1 + $0x5c0] ss:$16 sps:$4 sm:$0xff]   ;;  %v5126_v0 = vld [vmem:[%s7260_s1 + $0x5c8] ss:$16 sps:$4 sm:$0xff]  }
  0x7f   :  { %1354 = vmatpush1.bf16.msra.mxu0 %v5030_v1  ;;  %1526 = vmatpush1.bf16.msra.mxu1 %v5033_v2  ;;  %v5131_v1 = vld [vmem:[%s7260_s1 + $0x5e4] ss:$16 sps:$4 sm:$0xff]   ;;  %v5134_v2 = vld [vmem:[%s7260_s1 + $0x5ec] ss:$16 sps:$4 sm:$0xff]  }
  0x80   :  { %1366 = vmatprep.subr.bf16.mxu0 %v5041_v3  ;;  %1538 = vmatprep.subr.bf16.mxu1 %v5044_v4  ;;  %v5129_v3 = vld [vmem:[%s7260_s1 + $0x5e0] ss:$16 sps:$4 sm:$0xff]   ;;  %v5132_v4 = vld [vmem:[%s7260_s1 + $0x5e8] ss:$16 sps:$4 sm:$0xff]  }
  0x82   :  { %1356 = vmatmul.mubr.bf16.vlgmr.msra.gmra.mrb[0].mxu0 %v5036_v5  ;;  %1528 = vmatmul.mubr.bf16.vlgmr.msra.gmra.mrb[0].mxu1 %v5036_v5  ;;  %v5140_v5 = vld [vmem:[%s7260_s1 + $0x604] ss:$16 sps:$4 sm:$0xff]  }
  0x83   :  { %1367 = vmatpush1.bf16.msra.mxu0 %v5039_v6  ;;  %1539 = vmatpush1.bf16.msra.mxu1 %v5042_v7  ;;  %v5143_v6 = vld [vmem:[%s7260_s1 + $0x60c] ss:$16 sps:$4 sm:$0xff]  }
  0x84   :  { %1368 = vmatprep.subr.bf16.mxu0 %v5047_v8  ;;  %1540 = vmatprep.subr.bf16.mxu1 %v5050_v9  ;;  %v5135_v7 = vld [vmem:[%s7261_s0 + $0x10] ss:$28 sps:$4 sm:$0xff]   ;;  %v5141_v9 = vld [vmem:[%s7260_s1 + $0x608] ss:$16 sps:$4 sm:$0xff]  }
  0x85   :  { %1398 = vmatprep.mubr.bf16.mxu0 %v5137_v12  ;;  %1570 = vmatprep.mubr.bf16.mxu1 %v5137_v12  ;;  %v5138_v8 = vld [vmem:[%s7260_s1 + $0x600] ss:$16 sps:$4 sm:$0xff]   ;;  %v5144_v12 = vld [vmem:[%s7261_s0 + $0x18] ss:$28 sps:$4 sm:$0xff]  }
  0x87   :  { %1369 = vmatpush1.bf16.msra.mxu0 %v5045_v10  ;;  %1541 = vmatpush1.bf16.msra.mxu1 %v5048_v11  ;;  %v5145_v10 = vld [vmem:[%s7262_s3 + $0x40] sm:$0xff]   ;;  %v5601_v11 = vmov 0  }
  0x88   :  { %1370 = vmatprep.subr.bf16.mxu0 %v5053_v13  ;;  %1542 = vmatprep.subr.bf16.mxu1 %v5056_v14  ;;  %v5146_v13 = vld [vmem:[%s7262_s3] sm:$0xff]   ;;  %v5147_v14 = vld [vmem:[%s7262_s3 + $0x48] sm:$0xff]  }
  0x8b   :  { %1371 = vmatpush1.bf16.msra.mxu0 %v5051_v15  ;;  %1543 = vmatpush1.bf16.msra.mxu1 %v5054_v16  ;;  %v5148_v15 = vld [vmem:[%s7262_s3 + $0x8] sm:$0xff]   ;;  %v5149_v16 = vld [vmem:[%s7262_s3 + $0x50] sm:$0xff]  }
  0x8c   :  { %1372 = vmatprep.subr.bf16.mxu0 %v5059_v17  ;;  %1544 = vmatprep.subr.bf16.mxu1 %v5062_v18  ;;  %v5150_v17 = vld [vmem:[%s7262_s3 + $0x10] sm:$0xff]   ;;  %v5151_v18 = vld [vmem:[%s7262_s3 + $0x58] sm:$0xff]  }
  0x8f   :  { %1373 = vmatpush1.bf16.msra.mxu0 %v5057_v19  ;;  %1545 = vmatpush1.bf16.msra.mxu1 %v5060_v20  ;;  %v5152_v19 = vld [vmem:[%s7262_s3 + $0x18] sm:$0xff]   ;;  %v5153_v20 = vld [vmem:[%s7262_s3 + $0x60] sm:$0xff]  }
  0x90   :  { %1374 = vmatprep.subr.bf16.mxu0 %v5065_v21  ;;  %1546 = vmatprep.subr.bf16.mxu1 %v5068_v22  ;;  %v5154_v21 = vld [vmem:[%s7262_s3 + $0x20] sm:$0xff]   ;;  %v5155_v22 = vld [vmem:[%s7262_s3 + $0x68] sm:$0xff]  }
  0x93   :  { %1375 = vmatpush1.bf16.msra.mxu0 %v5063_v23  ;;  %1547 = vmatpush1.bf16.msra.mxu1 %v5066_v24  ;;  %v5156_v23 = vld [vmem:[%s7262_s3 + $0x28] sm:$0xff]   ;;  %v5157_v24 = vld [vmem:[%s7262_s3 + $0x70] sm:$0xff]  }
  0x94   :  { %1376 = vmatprep.subr.bf16.mxu0 %v5071_v25  ;;  %1548 = vmatprep.subr.bf16.mxu1 %v5074_v26  ;;  %v5158_v25 = vld [vmem:[%s7262_s3 + $0x30] sm:$0xff]   ;;  %v5159_v26 = vld [vmem:[%s7262_s3 + $0x78] sm:$0xff]  }
  0x97   :  { %1377 = vmatpush1.bf16.msra.mxu0 %v5069_v27  ;;  %1549 = vmatpush1.bf16.msra.mxu1 %v5072_v28  ;;  %v5160_v27 = vld [vmem:[%s7262_s3 + $0x38] sm:$0xff]   ;;  %v5161_v28 = vld [vmem:[%s7262_s3 + $0xc0] sm:$0xff]  }
  0x98   :  { %1378 = vmatprep.subr.bf16.mxu0 %v5077_v29  ;;  %1550 = vmatprep.subr.bf16.mxu1 %v5080_v30  ;;  %v241_v29 = vlaneseq }
  0x9a   :  { %v6322_v30 = vshrl.u32 %v241_v29, 7  ;;  %v5194_v29 = vld [vmem:[%s7264_s5 + $0x4c] ss:$16 sps:$4 sm:$0xff]  }
  0x9b   :  { %1379 = vmatpush1.bf16.msra.mxu0 %v5075_v31  ;;  %1551 = vmatpush1.bf16.msra.mxu1 %v5078_v32 }
  0x9c   :  { %1380 = vmatprep.subr.bf16.mxu0 %v5083_v33  ;;  %1552 = vmatprep.subr.bf16.mxu1 %v5086_v34  ;;  %v6325_v31 = vsub.s32 0, %v6322_v30  ;;  %v6328_v32 = vsub.s32 2, %v6322_v30  ;;  %v239_v33 = vld [vmem:[%s7263_s2] sm:$0xf]  ;;  %v6334_v34 = vsub.s32 1, %v6322_v30 }
  0x9f   :  { %1381 = vmatpush1.bf16.msra.mxu0 %v5081_v35  ;;  %1553 = vmatpush1.bf16.msra.mxu1 %v5084_v36  ;;  %v6337_v35 = vsub.s32 3, %v6322_v30  ;;  %v244_v36 = vrot.slane %v239_v33, %v6325_v31 }
  0xa0   :  { %1382 = vmatprep.subr.bf16.mxu0 %v5089_v37  ;;  %1554 = vmatprep.subr.bf16.mxu1 %v5092_v38  ;;  %v252_v37 = vrot.slane %v239_v33, %v6328_v32  ;;  %v248_v38 = vrot.slane %v239_v33, %v6334_v34 }
  0xa3   :  { %1383 = vmatpush1.bf16.msra.mxu0 %v5087_v39  ;;  %1555 = vmatpush1.bf16.msra.mxu1 %v5090_v40  ;;  %v256_v39 = vrot.slane %v239_v33, %v6337_v35  ;;  %v5192_v33 = vld [vmem:[%s7264_s5 + $0x48] ss:$16 sps:$4 sm:$0xff]  }
  0xa4   :  { %1384 = vmatprep.subr.bf16.mxu0 %v5095_v41  ;;  %1556 = vmatprep.subr.bf16.mxu1 %v5098_v42 }
  0xa7   :  { %1385 = vmatpush1.bf16.msra.mxu0 %v5093_v43  ;;  %1557 = vmatpush1.bf16.msra.mxu1 %v5096_v44 }
  0xa8   :  { %1386 = vmatprep.subr.bf16.mxu0 %v5101_v45  ;;  %1558 = vmatprep.subr.bf16.mxu1 %v5104_v46 }
  0xab   :  { %1387 = vmatpush1.bf16.msra.mxu0 %v5099_v47  ;;  %1559 = vmatpush1.bf16.msra.mxu1 %v5102_v48 }
  0xac   :  { %1388 = vmatprep.subr.bf16.mxu0 %v5107_v49  ;;  %1560 = vmatprep.subr.bf16.mxu1 %v5110_v50 }
  0xaf   :  { %1389 = vmatpush1.bf16.msra.mxu0 %v5105_v51  ;;  %1561 = vmatpush1.bf16.msra.mxu1 %v5108_v52 }
  0xb0   :  { %1390 = vmatprep.subr.bf16.mxu0 %v5113_v53  ;;  %1562 = vmatprep.subr.bf16.mxu1 %v5116_v54 }
  0xb3   :  { %1391 = vmatpush1.bf16.msra.mxu0 %v5111_v55  ;;  %1563 = vmatpush1.bf16.msra.mxu1 %v5114_v56 }
  0xb4   :  { %1392 = vmatprep.subr.bf16.mxu0 %v5119_v57  ;;  %1564 = vmatprep.subr.bf16.mxu1 %v5122_v58 }
  0xb7   :  { %1393 = vmatpush1.bf16.msra.mxu0 %v5117_v59  ;;  %1565 = vmatpush1.bf16.msra.mxu1 %v5120_v60 }
  0xb8   :  { %1394 = vmatprep.subr.bf16.mxu0 %v5125_v61  ;;  %1566 = vmatprep.subr.bf16.mxu1 %v5128_v62 }
  0xbb   :  { %1395 = vmatpush1.bf16.msra.mxu0 %v5123_v63  ;;  %1567 = vmatpush1.bf16.msra.mxu1 %v5126_v0 }
  0xbc   :  { %1396 = vmatprep.subr.bf16.mxu0 %v5131_v1  ;;  %1568 = vmatprep.subr.bf16.mxu1 %v5134_v2 }
  0xbf   :  { %1397 = vmatpush1.bf16.msra.mxu0 %v5129_v3  ;;  %1569 = vmatpush1.bf16.msra.mxu1 %v5132_v4  ;;  %v5162_v4 = vld [vmem:[%s7262_s3 + $0x80] sm:$0xff]  }
  0xc0   :  { %1409 = vmatprep.subr.bf16.mxu0 %v5140_v5  ;;  %1581 = vmatprep.subr.bf16.mxu1 %v5143_v6  ;;  %v5163_v5 = vld [vmem:[%s7262_s3 + $0xc8] sm:$0xff]  }
  0xc1   :  { %v5164_v6 = vld [vmem:[%s7262_s3 + $0x88] sm:$0xff]  }
  0xc2   :  { %1399 = vmatmul.mubr.bf16.vlgmr.msra.gmra.mrb[0].mxu0 %v5135_v7  ;;  %1571 = vmatmul.mubr.bf16.vlgmr.msra.gmra.mrb[0].mxu1 %v5135_v7  ;;  %v5165_v7 = vld [vmem:[%s7262_s3 + $0xd0] sm:$0xff]  }
  0xc3   :  { %1410 = vmatpush1.bf16.msra.mxu0 %v5138_v8  ;;  %1582 = vmatpush1.bf16.msra.mxu1 %v5141_v9  ;;  %v5166_v8 = vld [vmem:[%s7262_s3 + $0x90] sm:$0xff]   ;;  %v5167_v9 = vld [vmem:[%s7262_s3 + $0xd8] sm:$0xff]  }
  0xc4   :  { %1441 = vmatprep.mubr.bf16.mxu0 %v5601_v11  ;;  %1613 = vmatprep.mubr.bf16.mxu1 %v5601_v11 }
  0xc5   :  { %4696 = vmatprep.subr.bf16.mxu1 %v5145_v10  ;;  %v5168_v10 = vld [vmem:[%s7262_s3 + $0x98] sm:$0xff]  }
  0xce   :  { %4391 = vmatmul.mubr.msk.bf16.vlgmr.msra.gmra.mrb[0].mxu0 %vm1276_vm0, %v5144_v12  ;;  %4392 = vmatmul.mubr.msk.bf16.vlgmr.msra.gmra.mrb[0].mxu1 %vm1276_vm0, %v5144_v12  ;;  %v5169_v12 = vld [vmem:[%s7262_s3 + $0xe0] sm:$0xff]  }
  0xcf   :  { %4697 = vmatpush3.bf16.msra.mxu1 %v5146_v13  ;;  %2228 = vmatprep.mubr.bf16.mxu0 %v5601_v11  ;;  %v5170_v13 = vld [vmem:[%s7262_s3 + $0xa0] sm:$0xff]  }
  0xd0   :  { %4698 = vmatprep.subr.bf16.mxu1 %v5147_v14  ;;  %v5171_v14 = vld [vmem:[%s7262_s3 + $0xe8] sm:$0xff]  }
  0xd3   :  { %4699 = vmatpush3.bf16.msra.mxu1 %v5148_v15  ;;  %v5172_v15 = vld [vmem:[%s7262_s3 + $0xa8] sm:$0xff]  }
  0xd4   :  { %4700 = vmatprep.subr.bf16.mxu1 %v5149_v16  ;;  %v5173_v16 = vld [vmem:[%s7262_s3 + $0xf0] sm:$0xff]  }
  0xd7   :  { %4701 = vmatpush3.bf16.msra.mxu1 %v5150_v17  ;;  %v5174_v17 = vld [vmem:[%s7262_s3 + $0xb0] sm:$0xff]  }
  0xd8   :  { %4702 = vmatprep.subr.bf16.mxu1 %v5151_v18  ;;  %v5175_v18 = vld [vmem:[%s7262_s3 + $0xf8] sm:$0xff]  }
  0xdb   :  { %4703 = vmatpush3.bf16.msra.mxu1 %v5152_v19  ;;  %v5176_v19 = vld [vmem:[%s7262_s3 + $0xb8] sm:$0xff]  }
  0xdc   :  { %4704 = vmatprep.subr.bf16.mxu1 %v5153_v20  ;;  %v5177_v20 = vld [vmem:[%s7264_s5] ss:$16 sps:$4 sm:$0xff]  }
  0xdf   :  { %4705 = vmatpush3.bf16.msra.mxu1 %v5154_v21  ;;  %v5179_v21 = vld [vmem:[%s7264_s5 + $0x4] ss:$16 sps:$4 sm:$0xff]  }
  0xe0   :  { %4706 = vmatprep.subr.bf16.mxu1 %v5155_v22  ;;  %v5180_v22 = vld [vmem:[%s7264_s5 + $0x8] ss:$16 sps:$4 sm:$0xff]   ;;  %2196 = vmatprep.subr.bf16.mxu0 %v5179_v21  ;;  %v5237_v21 = vld [vmem:[%s7265_s7 + $0x70] ss:$28 sps:$4 sm:$0xff]  }
  0xe1   :  { %2197 = vmatpush1.bf16.msra.mxu0 %v5177_v20  ;;  %v5242_v20 = vld [vmem:[%s7265_s7 + $0x7c] ss:$28 sps:$4 sm:$0xff]  }
  0xe3   :  { %4707 = vmatpush3.bf16.msra.mxu1 %v5156_v23  ;;  %v5182_v23 = vld [vmem:[%s7264_s5 + $0xc] ss:$16 sps:$4 sm:$0xff]  }
  0xe4   :  { %4708 = vmatprep.subr.bf16.mxu1 %v5157_v24  ;;  %v5185_v24 = vld [vmem:[%s7264_s5 + $0x24] ss:$16 sps:$4 sm:$0xff]  }
  0xe5   :  { %2198 = vmatprep.subr.bf16.mxu0 %v5185_v24  ;;  %v5243_v24 = vld [vmem:[%s7265_s7 + $0xa8] ss:$28 sps:$4 sm:$0xff]  }
  0xe7   :  { %4709 = vmatpush3.bf16.msra.mxu1 %v5158_v25  ;;  %v5186_v25 = vld [vmem:[%s7264_s5 + $0x28] ss:$16 sps:$4 sm:$0xff]  }
  0xe8   :  { %4710 = vmatprep.subr.bf16.mxu1 %v5159_v26  ;;  %v5188_v26 = vld [vmem:[%s7264_s5 + $0x2c] ss:$16 sps:$4 sm:$0xff]  }
  0xeb   :  { %4711 = vmatpush3.bf16.msra.mxu1 %v5160_v27  ;;  %v5191_v27 = vld [vmem:[%s7264_s5 + $0x44] ss:$16 sps:$4 sm:$0xff]  }
  0xec   :  { %4718 = vmatprep.subr.bf16.mxu1 %v5161_v28  ;;  %v5189_v28 = vld [vmem:[%s7264_s5 + $0x40] ss:$16 sps:$4 sm:$0xff]  }
 0x1a1   :  { %v1443_v40 = vpop.f32.mrb[0].mxu0  ;;  %v1615_v41 = vpop.f32.mrb[0].mxu1 }
 0x1a2   :  { %v4784_v42 = vadd.f32 %v1443_v40, %v244_v36  ;;  %v4788_v43 = vadd.f32 %v1615_v41, %v252_v37  ;;  %v1445_v44 = vpop.f32.mrb[1].mxu0  ;;  %v1617_v45 = vpop.f32.mrb[1].mxu1  ;;  %v5203_v40 = vld [vmem:[%s7264_s5 + $0x84] ss:$16 sps:$4 sm:$0xff]   ;;  %v5201_v41 = vld [vmem:[%s7264_s5 + $0x80] ss:$16 sps:$4 sm:$0xff]  }
 0x1a3   :  { %v4785_v46 = vadd.f32 %v1445_v44, %v248_v38  ;;  %v4789_v47 = vadd.f32 %v1617_v45, %v256_v39  ;;  %v1447_v48 = vpop.f32.mrb[2].mxu0  ;;  %v1619_v49 = vpop.f32.mrb[2].mxu1  ;;  %v5209_v44 = vld [vmem:[%s7264_s5 + $0xa4] ss:$16 sps:$4 sm:$0xff]   ;;  %v5212_v45 = vld [vmem:[%s7264_s5 + $0xac] ss:$16 sps:$4 sm:$0xff]  }
 0x1a4   :  { %v4786_v50 = vadd.f32 %v1447_v48, %v244_v36  ;;  %v4790_v51 = vadd.f32 %v1619_v49, %v252_v37  ;;  %v1449_v52 = vpop.f32.mrb[3].mxu0  ;;  %v1621_v53 = vpop.f32.mrb[3].mxu1  ;;  %v1624_v56 = vmax.f32 %v4784_v42, 0.0  ;;  %v1626_v57 = vmax.f32 %v4788_v43, 0.0  ;;  %v5197_v36 = vld [vmem:[%s7264_s5 + $0x64] ss:$16 sps:$4 sm:$0xff]  }
 0x1a5   :  { %v4787_v54 = vadd.f32 %v1449_v52, %v248_v38  ;;  %v4791_v55 = vadd.f32 %v1621_v53, %v256_v39  ;;  %v1625_v60 = vmax.f32 %v4785_v46, 0.0  ;;  %v1627_v61 = vmax.f32 %v4789_v47, 0.0  ;;  %v5200_v37 = vld [vmem:[%s7264_s5 + $0x6c] ss:$16 sps:$4 sm:$0xff]   ;;  %v5195_v38 = vld [vmem:[%s7264_s5 + $0x60] ss:$16 sps:$4 sm:$0xff]  }
 0x1a6   :  { %v1628_v58 = vmax.f32 %v4786_v50, 0.0  ;;  %v1630_v59 = vmax.f32 %v4790_v51, 0.0  ;;  %v5198_v39 = vld [vmem:[%s7264_s5 + $0x68] ss:$16 sps:$4 sm:$0xff]   ;;  %v5206_v42 = vld [vmem:[%s7264_s5 + $0x8c] ss:$16 sps:$4 sm:$0xff]  }
 0x1a7   :  { %v1629_v62 = vmax.f32 %v4787_v54, 0.0  ;;  %v1631_v63 = vmax.f32 %v4791_v55, 0.0  ;;  %v5204_v43 = vld [vmem:[%s7264_s5 + $0x88] ss:$16 sps:$4 sm:$0xff]   ;;  %v5207_v46 = vld [vmem:[%s7264_s5 + $0xa0] ss:$16 sps:$4 sm:$0xff]  }
 0x1a8   :  { %v1632_v0 = vpack.c.bf16 %v1628_v58, %v1624_v56  ;;  %v1634_v1 = vpack.c.bf16 %v1630_v59, %v1626_v57  ;;  %v5210_v47 = vld [vmem:[%s7264_s5 + $0xa8] ss:$16 sps:$4 sm:$0xff]   ;;  %v5215_v48 = vld [vmem:[%s7264_s5 + $0xc4] ss:$16 sps:$4 sm:$0xff]   ;;  %v5218_v49 = vld [vmem:[%s7264_s5 + $0xcc] ss:$16 sps:$4 sm:$0xff]  }
 0x1a9   :  { %v1633_v2 = vpack.c.bf16 %v1629_v62, %v1625_v60  ;;  %v1635_v3 = vpack.c.bf16 %v1631_v63, %v1627_v61  ;;  %v5213_v50 = vld [vmem:[%s7264_s5 + $0xc0] ss:$16 sps:$4 sm:$0xff]   ;;  %v5216_v51 = vld [vmem:[%s7264_s5 + $0xc8] ss:$16 sps:$4 sm:$0xff]   ;;  %v5221_v52 = vld [vmem:[%s7264_s5 + $0xe4] ss:$16 sps:$4 sm:$0xff]  }
 0x1aa   :  { %v5224_v53 = vld [vmem:[%s7264_s5 + $0xec] ss:$16 sps:$4 sm:$0xff]   ;;  %v5219_v54 = vld [vmem:[%s7264_s5 + $0xe0] ss:$16 sps:$4 sm:$0xff]   ;;  %v5222_v55 = vld [vmem:[%s7264_s5 + $0xe8] ss:$16 sps:$4 sm:$0xff]  }
 0x1ab   :  { %1931 = vmatprep.mubr.bf16.mxu1 %v1633_v2  ;;  %v5227_v56 = vld [vmem:[%s7265_s7 + $0x4] ss:$28 sps:$4 sm:$0xff]   ;;  %v5230_v57 = vld [vmem:[%s7265_s7 + $0xc] ss:$28 sps:$4 sm:$0xff]  }
 0x1ac   :  { %1932 = vmatmul.mubr.bf16.vlgmr.msra.gmra.mrb[4].mxu1 %v1632_v0  ;;  %v4393_v0 = vld [vmem:[%s7266_s4] ss:$0 sm:$0xff] }
 0x1ad   :  { %4719 = vmatpush3.bf16.msra.mxu1 %v5162_v4  ;;  %1972 = vmatprep.mubr.bf16.mxu1 %v1635_v3 }
 0x1ae   :  { %4720 = vmatprep.subr.bf16.mxu1 %v5163_v5 }
 0x1b1   :  { %4721 = vmatpush3.bf16.msra.mxu1 %v5164_v6 }
 0x1b2   :  { %4722 = vmatprep.subr.bf16.mxu1 %v5165_v7 }
 0x1b5   :  { %4723 = vmatpush3.bf16.msra.mxu1 %v5166_v8 }
 0x1b6   :  { %4724 = vmatprep.subr.bf16.mxu1 %v5167_v9 }
 0x1b9   :  { %4725 = vmatpush3.bf16.msra.mxu1 %v5168_v10 }
 0x1ba   :  { %4726 = vmatprep.subr.bf16.mxu1 %v5169_v12  ;;  %v5225_v12 = vld [vmem:[%s7265_s7] ss:$28 sps:$4 sm:$0xff]  }
 0x1bd   :  { %4727 = vmatpush3.bf16.msra.mxu1 %v5170_v13  ;;  %v5228_v13 = vld [vmem:[%s7265_s7 + $0x8] ss:$28 sps:$4 sm:$0xff]  }
 0x1be   :  { %4728 = vmatprep.subr.bf16.mxu1 %v5171_v14 }
 0x1c1   :  { %4729 = vmatpush3.bf16.msra.mxu1 %v5172_v15  ;;  %v5233_v15 = vld [vmem:[%s7265_s7 + $0x3c] ss:$28 sps:$4 sm:$0xff]  }
 0x1c2   :  { %4730 = vmatprep.subr.bf16.mxu1 %v5173_v16  ;;  %v5236_v16 = vld [vmem:[%s7265_s7 + $0x44] ss:$28 sps:$4 sm:$0xff]  }
 0x1c5   :  { %4731 = vmatpush3.bf16.msra.mxu1 %v5174_v17  ;;  %v5231_v17 = vld [vmem:[%s7265_s7 + $0x38] ss:$28 sps:$4 sm:$0xff]  }
 0x1c6   :  { %4732 = vmatprep.subr.bf16.mxu1 %v5175_v18  ;;  %v5234_v18 = vld [vmem:[%s7265_s7 + $0x40] ss:$28 sps:$4 sm:$0xff]  }
 0x1c9   :  { %4733 = vmatpush3.bf16.msra.mxu1 %v5176_v19  ;;  %v5239_v19 = vld [vmem:[%s7265_s7 + $0x74] ss:$28 sps:$4 sm:$0xff]  }
 0x1ca   :  { %2239 = vmatprep.subr.bf16.mxu1 %v5182_v23  ;;  %v5245_v23 = vld [vmem:[%s7265_s7 + $0xac] ss:$28 sps:$4 sm:$0xff]  }
 0x1cc   :  { %1973 = vmatmul.mubr.bf16.vlgmr.msra.gmra.mrb[8].mxu1 %v1634_v1 }
 0x1cd   :  { %2271 = vmatprep.mubr.bf16.mxu1 %v5601_v11  ;;  %v5183_v11 = vld [vmem:[%s7264_s5 + $0x20] ss:$16 sps:$4 sm:$0xff]   ;;  %2240 = vmatpush1.bf16.msra.mxu1 %v5180_v22  ;;  %v5240_v22 = vld [vmem:[%s7265_s7 + $0x78] ss:$28 sps:$4 sm:$0xff]  }
 0x1ce   :  { %2241 = vmatprep.subr.bf16.mxu1 %v5188_v26  ;;  %2199 = vmatpush1.bf16.msra.mxu0 %v5183_v11  ;;  %v5248_v11 = vld [vmem:[%s7265_s7 + $0xb4] ss:$28 sps:$4 sm:$0xff]   ;;  %v5251_v26 = vld [vmem:[%s7265_s7 + $0xe4] ss:$28 sps:$4 sm:$0xff]  }
 0x1cf   :  { %2200 = vmatprep.subr.bf16.mxu0 %v5191_v27  ;;  %v5254_v27 = vld [vmem:[%s7265_s7 + $0xec] ss:$28 sps:$4 sm:$0xff]  }
 0x1d1   :  { %2242 = vmatpush1.bf16.msra.mxu1 %v5186_v25  ;;  %v5246_v25 = vld [vmem:[%s7265_s7 + $0xb0] ss:$28 sps:$4 sm:$0xff]  }
 0x1d2   :  { %2243 = vmatprep.subr.bf16.mxu1 %v5194_v29  ;;  %2201 = vmatpush1.bf16.msra.mxu0 %v5189_v28  ;;  %v5249_v28 = vld [vmem:[%s7265_s7 + $0xe0] ss:$28 sps:$4 sm:$0xff]   ;;  %v5252_v29 = vld [vmem:[%s7265_s7 + $0xe8] ss:$28 sps:$4 sm:$0xff]  }
 0x1d3   :  { %2202 = vmatprep.subr.bf16.mxu0 %v5197_v36  ;;  %v5260_v36 = vld [vmem:[%s7265_s7 + $0x124] ss:$28 sps:$4 sm:$0xff]  }
 0x1d5   :  { %2244 = vmatpush1.bf16.msra.mxu1 %v5192_v33  ;;  %v5257_v33 = vld [vmem:[%s7265_s7 + $0x11c] ss:$28 sps:$4 sm:$0xff]  }
 0x1d6   :  { %2245 = vmatprep.subr.bf16.mxu1 %v5200_v37  ;;  %2203 = vmatpush1.bf16.msra.mxu0 %v5195_v38  ;;  %v5255_v37 = vld [vmem:[%s7265_s7 + $0x118] ss:$28 sps:$4 sm:$0xff]   ;;  %v5258_v38 = vld [vmem:[%s7265_s7 + $0x120] ss:$28 sps:$4 sm:$0xff]  }
 0x1d7   :  { %2204 = vmatprep.subr.bf16.mxu0 %v5203_v40  ;;  %v5266_v40 = vld [vmem:[%s7265_s7 + $0x15c] ss:$28 sps:$4 sm:$0xff]  }
 0x1d9   :  { %2246 = vmatpush1.bf16.msra.mxu1 %v5198_v39  ;;  %v5263_v39 = vld [vmem:[%s7265_s7 + $0x154] ss:$28 sps:$4 sm:$0xff]  }
 0x1da   :  { %2247 = vmatprep.subr.bf16.mxu1 %v5206_v42  ;;  %2205 = vmatpush1.bf16.msra.mxu0 %v5201_v41  ;;  %v5261_v41 = vld [vmem:[%s7265_s7 + $0x150] ss:$28 sps:$4 sm:$0xff]   ;;  %v5264_v42 = vld [vmem:[%s7265_s7 + $0x158] ss:$28 sps:$4 sm:$0xff]  }
 0x1db   :  { %2206 = vmatprep.subr.bf16.mxu0 %v5209_v44  ;;  %v5272_v44 = vld [vmem:[%s7265_s7 + $0x194] ss:$28 sps:$4 sm:$0xff]  }
 0x1dd   :  { %2248 = vmatpush1.bf16.msra.mxu1 %v5204_v43  ;;  %v5269_v43 = vld [vmem:[%s7265_s7 + $0x18c] ss:$28 sps:$4 sm:$0xff]  }
 0x1de   :  { %2249 = vmatprep.subr.bf16.mxu1 %v5212_v45  ;;  %2207 = vmatpush1.bf16.msra.mxu0 %v5207_v46  ;;  %v5267_v45 = vld [vmem:[%s7265_s7 + $0x188] ss:$28 sps:$4 sm:$0xff]   ;;  %v5270_v46 = vld [vmem:[%s7265_s7 + $0x190] ss:$28 sps:$4 sm:$0xff]  }
 0x1df   :  { %2208 = vmatprep.subr.bf16.mxu0 %v5215_v48  ;;  %v5278_v48 = vld [vmem:[%s7265_s7 + $0x1cc] ss:$28 sps:$4 sm:$0xff]  }
 0x1e1   :  { %2250 = vmatpush1.bf16.msra.mxu1 %v5210_v47  ;;  %v5275_v47 = vld [vmem:[%s7265_s7 + $0x1c4] ss:$28 sps:$4 sm:$0xff]  }
 0x1e2   :  { %2251 = vmatprep.subr.bf16.mxu1 %v5218_v49  ;;  %2209 = vmatpush1.bf16.msra.mxu0 %v5213_v50  ;;  %v5273_v49 = vld [vmem:[%s7265_s7 + $0x1c0] ss:$28 sps:$4 sm:$0xff]   ;;  %v5276_v50 = vld [vmem:[%s7265_s7 + $0x1c8] ss:$28 sps:$4 sm:$0xff]  }
 0x1e3   :  { %2210 = vmatprep.subr.bf16.mxu0 %v5221_v52  ;;  %v5284_v52 = vld [vmem:[%s7265_s7 + $0x204] ss:$28 sps:$4 sm:$0xff]  }
 0x1e5   :  { %2252 = vmatpush1.bf16.msra.mxu1 %v5216_v51  ;;  %v5281_v51 = vld [vmem:[%s7265_s7 + $0x1fc] ss:$28 sps:$4 sm:$0xff]  }
 0x1e6   :  { %2253 = vmatprep.subr.bf16.mxu1 %v5224_v53  ;;  %2211 = vmatpush1.bf16.msra.mxu0 %v5219_v54  ;;  %v5279_v53 = vld [vmem:[%s7265_s7 + $0x1f8] ss:$28 sps:$4 sm:$0xff]   ;;  %v5282_v54 = vld [vmem:[%s7265_s7 + $0x200] ss:$28 sps:$4 sm:$0xff]  }
 0x1e7   :  { %3739 = vmatprep.subr.bf16.mxu0 %v5227_v56  ;;  %v5290_v56 = vld [vmem:[%s7265_s7 + $0x23c] ss:$28 sps:$4 sm:$0xff]  }
 0x1e9   :  { %2254 = vmatpush1.bf16.msra.mxu1 %v5222_v55  ;;  %v5287_v55 = vld [vmem:[%s7265_s7 + $0x234] ss:$28 sps:$4 sm:$0xff]  }
 0x1ea   :  { %3825 = vmatprep.subr.bf16.mxu1 %v5230_v57  ;;  %v5285_v57 = vld [vmem:[%s7265_s7 + $0x230] ss:$28 sps:$4 sm:$0xff]  }
 0x27f   :  { %v4712_v58 = vpop.f32.mrb[4].mxu1 }
 0x280   :  { %v4713_v59 = vpop.f32.mrb[5].mxu1 }
 0x281   :  { %v4714_v60 = vadd.f32 %v4713_v59, %v4712_v58  ;;  %v4715_v61 = vpop.f32.mrb[6].mxu1  ;;  %v5288_v58 = vld [vmem:[%s7265_s7 + $0x238] ss:$28 sps:$4 sm:$0xff]   ;;  %v5293_v59 = vld [vmem:[%s7265_s7 + $0x26c] ss:$28 sps:$4 sm:$0xff]  }
 0x282   :  { %v4716_v62 = vpop.f32.mrb[7].mxu1 }
 0x283   :  { %v4717_v63 = vadd.f32 %v4716_v62, %v4715_v61  ;;  %v1934_v3 = vadd.f32 %v4714_v60, %v4393_v0  ;;  %v5296_v60 = vld [vmem:[%s7265_s7 + $0x274] ss:$28 sps:$4 sm:$0xff]   ;;  %v5291_v61 = vld [vmem:[%s7265_s7 + $0x268] ss:$28 sps:$4 sm:$0xff]  }
 0x284   :  { %v5294_v62 = vld [vmem:[%s7265_s7 + $0x270] ss:$28 sps:$4 sm:$0xff]  }
 0x285   :  { %v1937_v7 = vadd.f32 %v4717_v63, %v4393_v0  ;;  %v5299_v63 = vld [vmem:[%s7265_s7 + $0x2a4] ss:$28 sps:$4 sm:$0xff]   ;;  %v5302_v0 = vld [vmem:[%s7265_s7 + $0x2ac] ss:$28 sps:$4 sm:$0xff]  }
 0x29f   :  { %v4734_v1 = vpop.f32.mrb[8].mxu1 }
 0x2a0   :  { %v4735_v2 = vpop.f32.mrb[9].mxu1 }
 0x2a1   :  { %v4736_v4 = vadd.f32 %v4735_v2, %v4734_v1  ;;  %v4737_v5 = vpop.f32.mrb[10].mxu1  ;;  %v5297_v1 = vld [vmem:[%s7265_s7 + $0x2a0] ss:$28 sps:$4 sm:$0xff]   ;;  %v5300_v2 = vld [vmem:[%s7265_s7 + $0x2a8] ss:$28 sps:$4 sm:$0xff]  }
 0x2a2   :  { %v4738_v6 = vpop.f32.mrb[11].mxu1 }
 0x2a3   :  { %v1975_v8 = vadd.f32 %v4736_v4, %v1934_v3  ;;  %v4739_v9 = vadd.f32 %v4738_v6, %v4737_v5  ;;  %v5305_v3 = vld [vmem:[%s7265_s7 + $0x2dc] ss:$28 sps:$4 sm:$0xff]   ;;  %v5308_v4 = vld [vmem:[%s7265_s7 + $0x2e4] ss:$28 sps:$4 sm:$0xff]  }
 0x2a4   :  { %v5303_v5 = vld [vmem:[%s7265_s7 + $0x2d8] ss:$28 sps:$4 sm:$0xff]   ;;  %v5306_v6 = vld [vmem:[%s7265_s7 + $0x2e0] ss:$28 sps:$4 sm:$0xff]  }
 0x2a5   :  { %4178 = vst.msk [vmem:[%s7267_s10] sm:$0xff] %vm4177_vm1, %v1975_v8  ;;  %v1978_v10 = vadd.f32 %v4739_v9, %v1937_v7  ;;  %v5311_v7 = vld [vmem:[%s7265_s7 + $0x314] ss:$28 sps:$4 sm:$0xff]  }
 0x2a6   :  { %v5309_v9 = vld [vmem:[%s7265_s7 + $0x310] ss:$28 sps:$4 sm:$0xff]  }
 0x2a7   :  { %v1981_v14 = vpack.c.bf16 %v1978_v10, %v1975_v8  ;;  %4179 = vst.msk [vmem:[%s7267_s10 + $0x8] sm:$0xff] %vm4177_vm1, %v1978_v10  ;;  %v5314_v8 = vld [vmem:[%s7265_s7 + $0x31c] ss:$28 sps:$4 sm:$0xff]  }
 0x2a8   :  { %v5312_v10 = vld [vmem:[%s7265_s7 + $0x318] ss:$28 sps:$4 sm:$0xff]  }
 0x2a9   :  { %2229 = vmatmul.mubr.bf16.vlgmr.msra.gmra.mrb[4].mxu0 %v1981_v14  ;;  %2272 = vmatmul.mubr.bf16.vlgmr.msra.gmra.mrb[12].mxu1 %v1981_v14  ;;  %v5315_v14 = vld [vmem:[%s7265_s7 + $0x348] ss:$28 sps:$4 sm:$0xff]  }
 0x2aa   :  { %3740 = vmatpush1.bf16.msra.mxu0 %v5225_v12  ;;  %3826 = vmatpush1.bf16.msra.mxu1 %v5228_v13  ;;  %v5317_v12 = vld [vmem:[%s7265_s7 + $0x34c] ss:$28 sps:$4 sm:$0xff]   ;;  %v5320_v13 = vld [vmem:[%s7265_s7 + $0x354] ss:$28 sps:$4 sm:$0xff]  }
 0x2ab   :  { %3741 = vmatprep.subr.bf16.mxu0 %v5233_v15  ;;  %3827 = vmatprep.subr.bf16.mxu1 %v5236_v16  ;;  %v5318_v15 = vld [vmem:[%s7265_s7 + $0x350] ss:$28 sps:$4 sm:$0xff]   ;;  %v5323_v16 = vld [vmem:[%s7265_s7 + $0x384] ss:$28 sps:$4 sm:$0xff]  }
 0x2ae   :  { %3742 = vmatpush1.bf16.msra.mxu0 %v5231_v17  ;;  %3828 = vmatpush1.bf16.msra.mxu1 %v5234_v18  ;;  %v5326_v17 = vld [vmem:[%s7265_s7 + $0x38c] ss:$28 sps:$4 sm:$0xff]   ;;  %v2014_v18 = vld [vmem:[%s7268_s6] sm:$0xf] }
 0x2af   :  { %3743 = vmatprep.subr.bf16.mxu0 %v5239_v19  ;;  %3829 = vmatprep.subr.bf16.mxu1 %v5242_v20  ;;  %v2019_v19 = vrot.slane %v2014_v18, %v6325_v31  ;;  %v2027_v20 = vrot.slane %v2014_v18, %v6328_v32 }
 0x2b2   :  { %3744 = vmatpush1.bf16.msra.mxu0 %v5237_v21  ;;  %3830 = vmatpush1.bf16.msra.mxu1 %v5240_v22  ;;  %v2023_v21 = vrot.slane %v2014_v18, %v6334_v34  ;;  %v2031_v22 = vrot.slane %v2014_v18, %v6337_v35  ;;  %v5365_v18 = vld [vmem:[%s7265_s7 + $0x50c] ss:$28 sps:$4 sm:$0xff]  }
 0x2b3   :  { %3745 = vmatprep.subr.bf16.mxu0 %v5245_v23  ;;  %3831 = vmatprep.subr.bf16.mxu1 %v5248_v11 }
 0x2b6   :  { %3746 = vmatpush1.bf16.msra.mxu0 %v5243_v24  ;;  %3832 = vmatpush1.bf16.msra.mxu1 %v5246_v25 }
 0x2b7   :  { %3747 = vmatprep.subr.bf16.mxu0 %v5251_v26  ;;  %3833 = vmatprep.subr.bf16.mxu1 %v5254_v27 }
 0x2ba   :  { %3748 = vmatpush1.bf16.msra.mxu0 %v5249_v28  ;;  %3834 = vmatpush1.bf16.msra.mxu1 %v5252_v29 }
 0x2bb   :  { %3749 = vmatprep.subr.bf16.mxu0 %v5257_v33  ;;  %3835 = vmatprep.subr.bf16.mxu1 %v5260_v36 }
 0x2be   :  { %3750 = vmatpush1.bf16.msra.mxu0 %v5255_v37  ;;  %3836 = vmatpush1.bf16.msra.mxu1 %v5258_v38 }
 0x2bf   :  { %3751 = vmatprep.subr.bf16.mxu0 %v5263_v39  ;;  %3837 = vmatprep.subr.bf16.mxu1 %v5266_v40 }
 0x2c2   :  { %3752 = vmatpush1.bf16.msra.mxu0 %v5261_v41  ;;  %3838 = vmatpush1.bf16.msra.mxu1 %v5264_v42 }
 0x2c3   :  { %3753 = vmatprep.subr.bf16.mxu0 %v5269_v43  ;;  %3839 = vmatprep.subr.bf16.mxu1 %v5272_v44 }
 0x2c6   :  { %3754 = vmatpush1.bf16.msra.mxu0 %v5267_v45  ;;  %3840 = vmatpush1.bf16.msra.mxu1 %v5270_v46 }
 0x2c7   :  { %3755 = vmatprep.subr.bf16.mxu0 %v5275_v47  ;;  %3841 = vmatprep.subr.bf16.mxu1 %v5278_v48 }
 0x2ca   :  { %3756 = vmatpush1.bf16.msra.mxu0 %v5273_v49  ;;  %3842 = vmatpush1.bf16.msra.mxu1 %v5276_v50 }
 0x2cb   :  { %3757 = vmatprep.subr.bf16.mxu0 %v5281_v51  ;;  %3843 = vmatprep.subr.bf16.mxu1 %v5284_v52 }
 0x2ce   :  { %3758 = vmatpush1.bf16.msra.mxu0 %v5279_v53  ;;  %3844 = vmatpush1.bf16.msra.mxu1 %v5282_v54 }
 0x2cf   :  { %3759 = vmatprep.subr.bf16.mxu0 %v5287_v55  ;;  %3845 = vmatprep.subr.bf16.mxu1 %v5290_v56  ;;  %v5321_v55 = vld [vmem:[%s7265_s7 + $0x380] ss:$28 sps:$4 sm:$0xff]   ;;  %v5324_v56 = vld [vmem:[%s7265_s7 + $0x388] ss:$28 sps:$4 sm:$0xff]  }
 0x2d2   :  { %3760 = vmatpush1.bf16.msra.mxu0 %v5285_v57  ;;  %3846 = vmatpush1.bf16.msra.mxu1 %v5288_v58  ;;  %v5329_v57 = vld [vmem:[%s7265_s7 + $0x3bc] ss:$28 sps:$4 sm:$0xff]   ;;  %v5332_v58 = vld [vmem:[%s7265_s7 + $0x3c4] ss:$28 sps:$4 sm:$0xff]  }
 0x2d3   :  { %3761 = vmatprep.subr.bf16.mxu0 %v5293_v59  ;;  %3847 = vmatprep.subr.bf16.mxu1 %v5296_v60  ;;  %v5327_v59 = vld [vmem:[%s7265_s7 + $0x3b8] ss:$28 sps:$4 sm:$0xff]   ;;  %v5330_v60 = vld [vmem:[%s7265_s7 + $0x3c0] ss:$28 sps:$4 sm:$0xff]  }
 0x2d6   :  { %3762 = vmatpush1.bf16.msra.mxu0 %v5291_v61  ;;  %3848 = vmatpush1.bf16.msra.mxu1 %v5294_v62  ;;  %v5335_v61 = vld [vmem:[%s7265_s7 + $0x3f4] ss:$28 sps:$4 sm:$0xff]   ;;  %v5338_v62 = vld [vmem:[%s7265_s7 + $0x3fc] ss:$28 sps:$4 sm:$0xff]  }
 0x2d7   :  { %3763 = vmatprep.subr.bf16.mxu0 %v5299_v63  ;;  %3849 = vmatprep.subr.bf16.mxu1 %v5302_v0  ;;  %v5333_v63 = vld [vmem:[%s7265_s7 + $0x3f0] ss:$28 sps:$4 sm:$0xff]   ;;  %v5336_v0 = vld [vmem:[%s7265_s7 + $0x3f8] ss:$28 sps:$4 sm:$0xff]  }
 0x2da   :  { %3764 = vmatpush1.bf16.msra.mxu0 %v5297_v1  ;;  %3850 = vmatpush1.bf16.msra.mxu1 %v5300_v2  ;;  %v5341_v1 = vld [vmem:[%s7265_s7 + $0x42c] ss:$28 sps:$4 sm:$0xff]   ;;  %v5344_v2 = vld [vmem:[%s7265_s7 + $0x434] ss:$28 sps:$4 sm:$0xff]  }
 0x2db   :  { %3765 = vmatprep.subr.bf16.mxu0 %v5305_v3  ;;  %3851 = vmatprep.subr.bf16.mxu1 %v5308_v4  ;;  %v5339_v3 = vld [vmem:[%s7265_s7 + $0x428] ss:$28 sps:$4 sm:$0xff]   ;;  %v5342_v4 = vld [vmem:[%s7265_s7 + $0x430] ss:$28 sps:$4 sm:$0xff]  }
 0x2de   :  { %3766 = vmatpush1.bf16.msra.mxu0 %v5303_v5  ;;  %3852 = vmatpush1.bf16.msra.mxu1 %v5306_v6  ;;  %v5347_v5 = vld [vmem:[%s7265_s7 + $0x464] ss:$28 sps:$4 sm:$0xff]   ;;  %v5350_v6 = vld [vmem:[%s7265_s7 + $0x46c] ss:$28 sps:$4 sm:$0xff]  }
 0x2df   :  { %3767 = vmatprep.subr.bf16.mxu0 %v5311_v7  ;;  %3853 = vmatprep.subr.bf16.mxu1 %v5314_v8  ;;  %v5345_v7 = vld [vmem:[%s7265_s7 + $0x460] ss:$28 sps:$4 sm:$0xff]   ;;  %v5348_v8 = vld [vmem:[%s7265_s7 + $0x468] ss:$28 sps:$4 sm:$0xff]  }
 0x2e2   :  { %3768 = vmatpush1.bf16.msra.mxu0 %v5309_v9  ;;  %3854 = vmatpush1.bf16.msra.mxu1 %v5312_v10  ;;  %v5353_v9 = vld [vmem:[%s7265_s7 + $0x49c] ss:$28 sps:$4 sm:$0xff]   ;;  %v5356_v10 = vld [vmem:[%s7265_s7 + $0x4a4] ss:$28 sps:$4 sm:$0xff]  }
 0x2e3   :  { %3769 = vmatprep.subr.bf16.mxu0 %v5317_v12  ;;  %3855 = vmatprep.subr.bf16.mxu1 %v5320_v13  ;;  %v5351_v12 = vld [vmem:[%s7265_s7 + $0x498] ss:$28 sps:$4 sm:$0xff]   ;;  %v5354_v13 = vld [vmem:[%s7265_s7 + $0x4a0] ss:$28 sps:$4 sm:$0xff]  }
 0x2e6   :  { %3770 = vmatpush1.bf16.msra.mxu0 %v5315_v14  ;;  %3856 = vmatpush1.bf16.msra.mxu1 %v5318_v15  ;;  %v5359_v14 = vld [vmem:[%s7265_s7 + $0x4d4] ss:$28 sps:$4 sm:$0xff]   ;;  %v5362_v15 = vld [vmem:[%s7265_s7 + $0x4dc] ss:$28 sps:$4 sm:$0xff]  }
 0x2e7   :  { %3782 = vmatprep.subr.bf16.mxu0 %v5323_v16  ;;  %3868 = vmatprep.subr.bf16.mxu1 %v5326_v17  ;;  %v5357_v16 = vld [vmem:[%s7265_s7 + $0x4d0] ss:$28 sps:$4 sm:$0xff]   ;;  %v5360_v17 = vld [vmem:[%s7265_s7 + $0x4d8] ss:$28 sps:$4 sm:$0xff]  }
 0x37c   :  { %v2230_v23 = vpop.f32.mrb[4].mxu0  ;;  %v2273_v11 = vpop.f32.mrb[12].mxu1 }
 0x37d   :  { %v2231_v24 = vadd.f32 %v2230_v23, %v2019_v19  ;;  %v2274_v25 = vadd.f32 %v2273_v11, %v2027_v20  ;;  %v2232_v26 = vpop.f32.mrb[5].mxu0  ;;  %v2275_v27 = vpop.f32.mrb[13].mxu1  ;;  %v5374_v23 = vld [vmem:[%s7265_s7 + $0x54c] ss:$28 sps:$4 sm:$0xff]   ;;  %v5369_v11 = vld [vmem:[%s7265_s7 + $0x540] ss:$28 sps:$4 sm:$0xff]  }
 0x37e   :  { %v2233_v28 = vadd.f32 %v2232_v26, %v2023_v21  ;;  %v2276_v29 = vadd.f32 %v2275_v27, %v2031_v22  ;;  %v2234_v33 = vpop.f32.mrb[6].mxu0  ;;  %v2277_v36 = vpop.f32.mrb[14].mxu1  ;;  %v5380_v26 = vld [vmem:[%s7265_s7 + $0x584] ss:$28 sps:$4 sm:$0xff]   ;;  %v5375_v27 = vld [vmem:[%s7265_s7 + $0x578] ss:$28 sps:$4 sm:$0xff]  }
 0x37f   :  { %v2235_v37 = vadd.f32 %v2234_v33, %v2019_v19  ;;  %v2278_v38 = vadd.f32 %v2277_v36, %v2027_v20  ;;  %v2236_v39 = vpop.f32.mrb[7].mxu0  ;;  %v2279_v40 = vpop.f32.mrb[15].mxu1  ;;  %v2282_v43 = vmax.f32 %v2231_v24, 0.0  ;;  %v2284_v44 = vmax.f32 %v2274_v25, 0.0  ;;  %v5368_v19 = vld [vmem:[%s7265_s7 + $0x514] ss:$28 sps:$4 sm:$0xff]  }
 0x380   :  { %v2237_v41 = vadd.f32 %v2236_v39, %v2023_v21  ;;  %v2280_v42 = vadd.f32 %v2279_v40, %v2031_v22  ;;  %v2283_v47 = vmax.f32 %v2233_v28, 0.0  ;;  %v2285_v48 = vmax.f32 %v2276_v29, 0.0  ;;  %v5363_v20 = vld [vmem:[%s7265_s7 + $0x508] ss:$28 sps:$4 sm:$0xff]   ;;  %v5366_v21 = vld [vmem:[%s7265_s7 + $0x510] ss:$28 sps:$4 sm:$0xff]  }
 0x381   :  { %v2286_v45 = vmax.f32 %v2235_v37, 0.0  ;;  %v2288_v46 = vmax.f32 %v2278_v38, 0.0  ;;  %v5371_v22 = vld [vmem:[%s7265_s7 + $0x544] ss:$28 sps:$4 sm:$0xff]   ;;  %v5377_v25 = vld [vmem:[%s7265_s7 + $0x57c] ss:$28 sps:$4 sm:$0xff]  }
 0x382   :  { %v2287_v49 = vmax.f32 %v2237_v41, 0.0  ;;  %v2289_v50 = vmax.f32 %v2280_v42, 0.0  ;;  %v5372_v24 = vld [vmem:[%s7265_s7 + $0x548] ss:$28 sps:$4 sm:$0xff]   ;;  %v5378_v28 = vld [vmem:[%s7265_s7 + $0x580] ss:$28 sps:$4 sm:$0xff]  }
 0x383   :  { %v6699_v51 = vpack.c.bf16 %v2286_v45, %v2282_v43  ;;  %v6701_v52 = vpack.c.bf16 %v2288_v46, %v2284_v44  ;;  %v5383_v29 = vld [vmem:[%s7265_s7 + $0x5b4] ss:$28 sps:$4 sm:$0xff]   ;;  %v5386_v33 = vld [vmem:[%s7265_s7 + $0x5bc] ss:$28 sps:$4 sm:$0xff]   ;;  %v5389_v38 = vld [vmem:[%s7265_s7 + $0x5ec] ss:$28 sps:$4 sm:$0xff]  }
 0x384   :  { %v6703_v53 = vpack.c.bf16 %v2287_v49, %v2283_v47  ;;  %v6705_v54 = vpack.c.bf16 %v2289_v50, %v2285_v48  ;;  %v5381_v36 = vld [vmem:[%s7265_s7 + $0x5b0] ss:$28 sps:$4 sm:$0xff]   ;;  %v5384_v37 = vld [vmem:[%s7265_s7 + $0x5b8] ss:$28 sps:$4 sm:$0xff]   ;;  %v5387_v40 = vld [vmem:[%s7265_s7 + $0x5e8] ss:$28 sps:$4 sm:$0xff]  }
 0x385   :  { %v5392_v39 = vld [vmem:[%s7265_s7 + $0x5f4] ss:$28 sps:$4 sm:$0xff]   ;;  %v5395_v42 = vld [vmem:[%s7265_s7 + $0x624] ss:$28 sps:$4 sm:$0xff]   ;;  %v5398_v43 = vld [vmem:[%s7265_s7 + $0x62c] ss:$28 sps:$4 sm:$0xff]  }
 0x386   :  { %3771 = vmatprep.mubr.bf16.mxu0 %v6703_v53  ;;  %3857 = vmatprep.mubr.bf16.mxu1 %v6703_v53  ;;  %v5390_v41 = vld [vmem:[%s7265_s7 + $0x5f0] ss:$28 sps:$4 sm:$0xff]   ;;  %v5393_v44 = vld [vmem:[%s7265_s7 + $0x620] ss:$28 sps:$4 sm:$0xff]   ;;  %v5396_v45 = vld [vmem:[%s7265_s7 + $0x628] ss:$28 sps:$4 sm:$0xff]  }
 0x387   :  { %3772 = vmatmul.mubr.bf16.vlgmr.msra.gmra.mrb[8].mxu0 %v6699_v51  ;;  %3858 = vmatmul.mubr.bf16.vlgmr.msra.gmra.mrb[16].mxu1 %v6699_v51  ;;  %v5401_v46 = vld [vmem:[%s7265_s7 + $0x65c] ss:$28 sps:$4 sm:$0xff]   ;;  %v5404_v47 = vld [vmem:[%s7265_s7 + $0x664] ss:$28 sps:$4 sm:$0xff]   ;;  %v5407_v50 = vld [vmem:[%s7265_s7 + $0x694] ss:$28 sps:$4 sm:$0xff]  }
 0x388   :  { %3783 = vmatpush1.bf16.msra.mxu0 %v5321_v55  ;;  %3869 = vmatpush1.bf16.msra.mxu1 %v5324_v56  ;;  %v5399_v48 = vld [vmem:[%s7265_s7 + $0x658] ss:$28 sps:$4 sm:$0xff]   ;;  %v5402_v49 = vld [vmem:[%s7265_s7 + $0x660] ss:$28 sps:$4 sm:$0xff]   ;;  %v5405_v56 = vld [vmem:[%s7265_s7 + $0x690] ss:$28 sps:$4 sm:$0xff]  }
 0x389   :  { %3814 = vmatprep.mubr.bf16.mxu0 %v6705_v54  ;;  %3900 = vmatprep.mubr.bf16.mxu1 %v6705_v54  ;;  %v5410_v55 = vld [vmem:[%s7265_s7 + $0x69c] ss:$28 sps:$4 sm:$0xff]  }
 0x38a   :  { %3784 = vmatprep.subr.bf16.mxu0 %v5329_v57  ;;  %3870 = vmatprep.subr.bf16.mxu1 %v5332_v58  ;;  %v5408_v57 = vld [vmem:[%s7265_s7 + $0x698] ss:$28 sps:$4 sm:$0xff]   ;;  %v5413_v58 = vld [vmem:[%s7265_s7 + $0x6cc] ss:$28 sps:$4 sm:$0xff]  }
 0x38c   :  { %3785 = vmatpush1.bf16.msra.mxu0 %v5327_v59  ;;  %3871 = vmatpush1.bf16.msra.mxu1 %v5330_v60  ;;  %v5416_v59 = vld [vmem:[%s7265_s7 + $0x6d4] ss:$28 sps:$4 sm:$0xff]   ;;  %v5411_v60 = vld [vmem:[%s7265_s7 + $0x6c8] ss:$28 sps:$4 sm:$0xff]  }
 0x38d   :  { %3786 = vmatprep.subr.bf16.mxu0 %v5335_v61  ;;  %3872 = vmatprep.subr.bf16.mxu1 %v5338_v62  ;;  %v5414_v61 = vld [vmem:[%s7265_s7 + $0x6d0] ss:$28 sps:$4 sm:$0xff]  }
 0x38e   :  { %v5419_v62 = vld [vmem:[%s7265_s7 + $0x14] ss:$28 sps:$4 sm:$0xff]  }
 0x390   :  { %3787 = vmatpush1.bf16.msra.mxu0 %v5333_v63  ;;  %3873 = vmatpush1.bf16.msra.mxu1 %v5336_v0  ;;  %v5420_v63 = vld [vmem:[%s7265_s7 + $0x1d8] ss:$28 sps:$4 sm:$0xff]   ;;  %v5417_v0 = vld [vmem:[%s7265_s7 + $0x10] ss:$28 sps:$4 sm:$0xff]  }
 0x391   :  { %3788 = vmatprep.subr.bf16.mxu0 %v5341_v1  ;;  %3874 = vmatprep.subr.bf16.mxu1 %v5344_v2  ;;  %v5421_v1 = vld [vmem:[%s7265_s7 + $0x18] ss:$28 sps:$4 sm:$0xff]   ;;  %v5424_v2 = vld [vmem:[%s7265_s7 + $0x4c] ss:$28 sps:$4 sm:$0xff]  }
 0x394   :  { %3789 = vmatpush1.bf16.msra.mxu0 %v5339_v3  ;;  %3875 = vmatpush1.bf16.msra.mxu1 %v5342_v4  ;;  %v5425_v3 = vld [vmem:[%s7265_s7 + $0x210] ss:$28 sps:$4 sm:$0xff]   ;;  %v5422_v4 = vld [vmem:[%s7265_s7 + $0x48] ss:$28 sps:$4 sm:$0xff]  }
 0x395   :  { %3790 = vmatprep.subr.bf16.mxu0 %v5347_v5  ;;  %3876 = vmatprep.subr.bf16.mxu1 %v5350_v6  ;;  %v5426_v5 = vld [vmem:[%s7265_s7 + $0x50] ss:$28 sps:$4 sm:$0xff]   ;;  %v5429_v6 = vld [vmem:[%s7265_s7 + $0x84] ss:$28 sps:$4 sm:$0xff]  }
 0x398   :  { %3791 = vmatpush1.bf16.msra.mxu0 %v5345_v7  ;;  %3877 = vmatpush1.bf16.msra.mxu1 %v5348_v8  ;;  %v5430_v7 = vld [vmem:[%s7265_s7 + $0x248] ss:$28 sps:$4 sm:$0xff]   ;;  %v5427_v8 = vld [vmem:[%s7265_s7 + $0x80] ss:$28 sps:$4 sm:$0xff]  }
 0x399   :  { %3792 = vmatprep.subr.bf16.mxu0 %v5353_v9  ;;  %3878 = vmatprep.subr.bf16.mxu1 %v5356_v10  ;;  %v5434_v9 = vld [vmem:[%s7265_s7 + $0xbc] ss:$28 sps:$4 sm:$0xff]  }
 0x39a   :  { %v5435_v10 = vld [vmem:[%s7265_s7 + $0x280] ss:$28 sps:$4 sm:$0xff]  }
 0x39c   :  { %3793 = vmatpush1.bf16.msra.mxu0 %v5351_v12  ;;  %3879 = vmatpush1.bf16.msra.mxu1 %v5354_v13  ;;  %v5432_v12 = vld [vmem:[%s7265_s7 + $0xb8] ss:$28 sps:$4 sm:$0xff]   ;;  %v5436_v13 = vld [vmem:[%s7265_s7 + $0xc0] ss:$28 sps:$4 sm:$0xff]  }
 0x39d   :  { %3794 = vmatprep.subr.bf16.mxu0 %v5359_v14  ;;  %3880 = vmatprep.subr.bf16.mxu1 %v5362_v15  ;;  %v5439_v14 = vld [vmem:[%s7265_s7 + $0xf4] ss:$28 sps:$4 sm:$0xff]  }
 0x39e   :  { %v5440_v15 = vld [vmem:[%s7265_s7 + $0x2b8] ss:$28 sps:$4 sm:$0xff]  }
 0x3a0   :  { %3795 = vmatpush1.bf16.msra.mxu0 %v5357_v16  ;;  %3881 = vmatpush1.bf16.msra.mxu1 %v5360_v17  ;;  %v5437_v16 = vld [vmem:[%s7265_s7 + $0xf0] ss:$28 sps:$4 sm:$0xff]   ;;  %v5441_v17 = vld [vmem:[%s7265_s7 + $0xf8] ss:$28 sps:$4 sm:$0xff]  }
 0x3a1   :  { %3796 = vmatprep.subr.bf16.mxu0 %v5365_v18  ;;  %3882 = vmatprep.subr.bf16.mxu1 %v5368_v19  ;;  %v5444_v18 = vld [vmem:[%s7265_s7 + $0x12c] ss:$28 sps:$4 sm:$0xff]  }
 0x3a2   :  { %v5445_v19 = vld [vmem:[%s7265_s7 + $0x2f0] ss:$28 sps:$4 sm:$0xff]  }
 0x3a4   :  { %3797 = vmatpush1.bf16.msra.mxu0 %v5363_v20  ;;  %3883 = vmatpush1.bf16.msra.mxu1 %v5366_v21  ;;  %v5442_v20 = vld [vmem:[%s7265_s7 + $0x128] ss:$28 sps:$4 sm:$0xff]   ;;  %v5446_v21 = vld [vmem:[%s7265_s7 + $0x130] ss:$28 sps:$4 sm:$0xff]  }
 0x3a5   :  { %3798 = vmatprep.subr.bf16.mxu0 %v5371_v22  ;;  %3884 = vmatprep.subr.bf16.mxu1 %v5374_v23  ;;  %v5449_v22 = vld [vmem:[%s7265_s7 + $0x164] ss:$28 sps:$4 sm:$0xff]  }
 0x3a6   :  { %v5450_v23 = vld [vmem:[%s7265_s7 + $0x328] ss:$28 sps:$4 sm:$0xff]  }
 0x3a8   :  { %3799 = vmatpush1.bf16.msra.mxu0 %v5369_v11  ;;  %3885 = vmatpush1.bf16.msra.mxu1 %v5372_v24  ;;  %v5447_v11 = vld [vmem:[%s7265_s7 + $0x160] ss:$28 sps:$4 sm:$0xff]   ;;  %v5451_v24 = vld [vmem:[%s7265_s7 + $0x168] ss:$28 sps:$4 sm:$0xff]  }
 0x3a9   :  { %3800 = vmatprep.subr.bf16.mxu0 %v5377_v25  ;;  %3886 = vmatprep.subr.bf16.mxu1 %v5380_v26  ;;  %v5454_v25 = vld [vmem:[%s7265_s7 + $0x19c] ss:$28 sps:$4 sm:$0xff]  }
 0x3aa   :  { %v5455_v26 = vld [vmem:[%s7265_s7 + $0x360] ss:$28 sps:$4 sm:$0xff]  }
 0x3ac   :  { %3801 = vmatpush1.bf16.msra.mxu0 %v5375_v27  ;;  %3887 = vmatpush1.bf16.msra.mxu1 %v5378_v28  ;;  %v5452_v27 = vld [vmem:[%s7265_s7 + $0x198] ss:$28 sps:$4 sm:$0xff]   ;;  %v5456_v28 = vld [vmem:[%s7265_s7 + $0x1a0] ss:$28 sps:$4 sm:$0xff]  }
 0x3ad   :  { %3802 = vmatprep.subr.bf16.mxu0 %v5383_v29  ;;  %3888 = vmatprep.subr.bf16.mxu1 %v5386_v33  ;;  %v5459_v29 = vld [vmem:[%s7265_s7 + $0x1d4] ss:$28 sps:$4 sm:$0xff]  }
 0x3ae   :  { %v5460_v33 = vld [vmem:[%s7265_s7 + $0x558] ss:$28 sps:$4 sm:$0xff]  }
 0x3b0   :  { %3803 = vmatpush1.bf16.msra.mxu0 %v5381_v36  ;;  %3889 = vmatpush1.bf16.msra.mxu1 %v5384_v37  ;;  %v5457_v36 = vld [vmem:[%s7265_s7 + $0x1d0] ss:$28 sps:$4 sm:$0xff]   ;;  %v5461_v37 = vld [vmem:[%s7265_s7 + $0x398] ss:$28 sps:$4 sm:$0xff]  }
 0x3b1   :  { %3804 = vmatprep.subr.bf16.mxu0 %v5389_v38  ;;  %3890 = vmatprep.subr.bf16.mxu1 %v5392_v39  ;;  %v5464_v38 = vld [vmem:[%s7265_s7 + $0x20c] ss:$28 sps:$4 sm:$0xff]  }
 0x3b2   :  { %v5465_v39 = vld [vmem:[%s7265_s7 + $0x590] ss:$28 sps:$4 sm:$0xff]  }
 0x3b4   :  { %3805 = vmatpush1.bf16.msra.mxu0 %v5387_v40  ;;  %3891 = vmatpush1.bf16.msra.mxu1 %v5390_v41  ;;  %v5462_v40 = vld [vmem:[%s7265_s7 + $0x208] ss:$28 sps:$4 sm:$0xff]   ;;  %v5466_v41 = vld [vmem:[%s7265_s7 + $0x3d0] ss:$28 sps:$4 sm:$0xff]  }
 0x3b5   :  { %3806 = vmatprep.subr.bf16.mxu0 %v5395_v42  ;;  %3892 = vmatprep.subr.bf16.mxu1 %v5398_v43  ;;  %v5469_v42 = vld [vmem:[%s7265_s7 + $0x244] ss:$28 sps:$4 sm:$0xff]  }
 0x3b6   :  { %v5470_v43 = vld [vmem:[%s7265_s7 + $0x5c8] ss:$28 sps:$4 sm:$0xff]  }
 0x3b8   :  { %3807 = vmatpush1.bf16.msra.mxu0 %v5393_v44  ;;  %3893 = vmatpush1.bf16.msra.mxu1 %v5396_v45  ;;  %v5467_v44 = vld [vmem:[%s7265_s7 + $0x240] ss:$28 sps:$4 sm:$0xff]   ;;  %v5471_v45 = vld [vmem:[%s7265_s7 + $0x408] ss:$28 sps:$4 sm:$0xff]  }
 0x3b9   :  { %3808 = vmatprep.subr.bf16.mxu0 %v5401_v46  ;;  %3894 = vmatprep.subr.bf16.mxu1 %v5404_v47  ;;  %v5474_v46 = vld [vmem:[%s7265_s7 + $0x27c] ss:$28 sps:$4 sm:$0xff]  }
 0x3ba   :  { %v5475_v47 = vld [vmem:[%s7265_s7 + $0x600] ss:$28 sps:$4 sm:$0xff]  }
 0x3bc   :  { %3809 = vmatpush1.bf16.msra.mxu0 %v5399_v48  ;;  %3895 = vmatpush1.bf16.msra.mxu1 %v5402_v49  ;;  %v5472_v48 = vld [vmem:[%s7265_s7 + $0x278] ss:$28 sps:$4 sm:$0xff]   ;;  %v5476_v49 = vld [vmem:[%s7265_s7 + $0x440] ss:$28 sps:$4 sm:$0xff]  }
 0x3bd   :  { %3810 = vmatprep.subr.bf16.mxu0 %v5407_v50  ;;  %3896 = vmatprep.subr.bf16.mxu1 %v5410_v55  ;;  %v5479_v50 = vld [vmem:[%s7265_s7 + $0x2b4] ss:$28 sps:$4 sm:$0xff]  }
 0x3be   :  { %v5480_v55 = vld [vmem:[%s7265_s7 + $0x638] ss:$28 sps:$4 sm:$0xff]  }
 0x3c0   :  { %3811 = vmatpush1.bf16.msra.mxu0 %v5405_v56  ;;  %3897 = vmatpush1.bf16.msra.mxu1 %v5408_v57  ;;  %v5477_v56 = vld [vmem:[%s7265_s7 + $0x2b0] ss:$28 sps:$4 sm:$0xff]   ;;  %v5481_v57 = vld [vmem:[%s7265_s7 + $0x478] ss:$28 sps:$4 sm:$0xff]  }
 0x3c1   :  { %3812 = vmatprep.subr.bf16.mxu0 %v5413_v58  ;;  %3898 = vmatprep.subr.bf16.mxu1 %v5416_v59  ;;  %v5484_v58 = vld [vmem:[%s7265_s7 + $0x2ec] ss:$28 sps:$4 sm:$0xff]  }
 0x3c2   :  { %v5485_v59 = vld [vmem:[%s7265_s7 + $0x670] ss:$28 sps:$4 sm:$0xff]  }
 0x3c4   :  { %3813 = vmatpush1.bf16.msra.mxu0 %v5411_v60  ;;  %3899 = vmatpush1.bf16.msra.mxu1 %v5414_v61  ;;  %v5482_v60 = vld [vmem:[%s7265_s7 + $0x2e8] ss:$28 sps:$4 sm:$0xff]   ;;  %v5486_v61 = vld [vmem:[%s7265_s7 + $0x4b0] ss:$28 sps:$4 sm:$0xff]  }
 0x3c5   :  { %3911 = vmatprep.subr.bf16.mxu0 %v5419_v62  ;;  %4740 = vmatprep.subr.bf16.mxu1 %v5420_v63  ;;  %v5489_v62 = vld [vmem:[%s7265_s7 + $0x324] ss:$28 sps:$4 sm:$0xff]  }
 0x3c6   :  { %v5490_v63 = vld [vmem:[%s7265_s7 + $0x6a8] ss:$28 sps:$4 sm:$0xff]  }
 0x3c7   :  { %3815 = vmatmul.mubr.bf16.vlgmr.msra.gmra.mrb[8].mxu0 %v6701_v52  ;;  %3901 = vmatmul.mubr.bf16.vlgmr.msra.gmra.mrb[16].mxu1 %v6701_v52 }
 0x3c8   :  { %3912 = vmatpush1.bf16.msra.mxu0 %v5417_v0  ;;  %3943 = vmatprep.mubr.bf16.mxu0 %v6703_v53  ;;  %v5487_v0 = vld [vmem:[%s7265_s7 + $0x320] ss:$28 sps:$4 sm:$0xff]  }
 0x3c9   :  { %4741 = vmatpush3.bf16.msra.mxu1 %v5421_v1  ;;  %4029 = vmatprep.mubr.bf16.mxu1 %v6703_v53  ;;  %v5431_v53 = vld [vmem:[%s7265_s7 + $0x88] ss:$28 sps:$4 sm:$0xff]  }
 0x3ca   :  { %3913 = vmatprep.subr.bf16.mxu0 %v5424_v2  ;;  %4742 = vmatprep.subr.bf16.mxu1 %v5425_v3  ;;  %v5491_v1 = vld [vmem:[%s7265_s7 + $0x4e8] ss:$28 sps:$4 sm:$0xff]   ;;  %v5494_v2 = vld [vmem:[%s7265_s7 + $0x35c] ss:$28 sps:$4 sm:$0xff]  }
 0x3cb   :  { %v5495_v3 = vld [vmem:[%s7265_s7 + $0x6e0] ss:$28 sps:$4 sm:$0xff]  }
 0x3cc   :  { %3914 = vmatpush1.bf16.msra.mxu0 %v5422_v4  ;;  %v5492_v4 = vld [vmem:[%s7265_s7 + $0x358] ss:$28 sps:$4 sm:$0xff]  }
 0x3cd   :  { %4743 = vmatpush3.bf16.msra.mxu1 %v5426_v5  ;;  %3915 = vmatprep.subr.bf16.mxu0 %v5429_v6  ;;  %v5496_v5 = vld [vmem:[%s7265_s7 + $0x520] ss:$28 sps:$4 sm:$0xff]   ;;  %v5499_v6 = vld [vmem:[%s7265_s7 + $0x394] ss:$28 sps:$4 sm:$0xff]  }
 0x3ce   :  { %4744 = vmatprep.subr.bf16.mxu1 %v5430_v7  ;;  %v5497_v7 = vld [vmem:[%s7265_s7 + $0x390] ss:$28 sps:$4 sm:$0xff]  }
 0x3d0   :  { %3916 = vmatpush1.bf16.msra.mxu0 %v5427_v8  ;;  %v5502_v8 = vld [vmem:[%s7265_s7 + $0x3cc] ss:$28 sps:$4 sm:$0xff]  }
 0x3d1   :  { %4745 = vmatpush3.bf16.msra.mxu1 %v5431_v53  ;;  %3917 = vmatprep.subr.bf16.mxu0 %v5434_v9  ;;  %v5500_v53 = vld [vmem:[%s7265_s7 + $0x3c8] ss:$28 sps:$4 sm:$0xff]  }
 0x3d2   :  { %4746 = vmatprep.subr.bf16.mxu1 %v5435_v10  ;;  %v5505_v9 = vld [vmem:[%s7265_s7 + $0x404] ss:$28 sps:$4 sm:$0xff]  }
 0x3d3   :  { %v5503_v10 = vld [vmem:[%s7265_s7 + $0x400] ss:$28 sps:$4 sm:$0xff]  }
 0x3d4   :  { %3918 = vmatpush1.bf16.msra.mxu0 %v5432_v12  ;;  %v5511_v12 = vld [vmem:[%s7265_s7 + $0x474] ss:$28 sps:$4 sm:$0xff]  }
 0x3d5   :  { %4747 = vmatpush3.bf16.msra.mxu1 %v5436_v13  ;;  %3919 = vmatprep.subr.bf16.mxu0 %v5439_v14  ;;  %v5509_v13 = vld [vmem:[%s7265_s7 + $0x470] ss:$28 sps:$4 sm:$0xff]  }
 0x3d6   :  { %4748 = vmatprep.subr.bf16.mxu1 %v5440_v15  ;;  %v5514_v14 = vld [vmem:[%s7265_s7 + $0x4ac] ss:$28 sps:$4 sm:$0xff]  }
 0x3d7   :  { %v5512_v15 = vld [vmem:[%s7265_s7 + $0x4a8] ss:$28 sps:$4 sm:$0xff]  }
 0x3d8   :  { %3920 = vmatpush1.bf16.msra.mxu0 %v5437_v16  ;;  %v5517_v16 = vld [vmem:[%s7265_s7 + $0x4e4] ss:$28 sps:$4 sm:$0xff]  }
 0x3d9   :  { %4749 = vmatpush3.bf16.msra.mxu1 %v5441_v17  ;;  %3921 = vmatprep.subr.bf16.mxu0 %v5444_v18  ;;  %v5515_v17 = vld [vmem:[%s7265_s7 + $0x4e0] ss:$28 sps:$4 sm:$0xff]  }
 0x3da   :  { %4750 = vmatprep.subr.bf16.mxu1 %v5445_v19  ;;  %v5520_v18 = vld [vmem:[%s7265_s7 + $0x51c] ss:$28 sps:$4 sm:$0xff]  }
 0x3db   :  { %v5518_v19 = vld [vmem:[%s7265_s7 + $0x518] ss:$28 sps:$4 sm:$0xff]  }
 0x3dc   :  { %3922 = vmatpush1.bf16.msra.mxu0 %v5442_v20  ;;  %v5523_v20 = vld [vmem:[%s7265_s7 + $0x554] ss:$28 sps:$4 sm:$0xff]  }
 0x3dd   :  { %4751 = vmatpush3.bf16.msra.mxu1 %v5446_v21  ;;  %3923 = vmatprep.subr.bf16.mxu0 %v5449_v22  ;;  %v5521_v21 = vld [vmem:[%s7265_s7 + $0x550] ss:$28 sps:$4 sm:$0xff]  }
 0x3de   :  { %4752 = vmatprep.subr.bf16.mxu1 %v5450_v23  ;;  %v5526_v22 = vld [vmem:[%s7265_s7 + $0x58c] ss:$28 sps:$4 sm:$0xff]  }
 0x3df   :  { %v5524_v23 = vld [vmem:[%s7265_s7 + $0x588] ss:$28 sps:$4 sm:$0xff]  }
 0x3e0   :  { %3924 = vmatpush1.bf16.msra.mxu0 %v5447_v11  ;;  %v5529_v11 = vld [vmem:[%s7265_s7 + $0x5c4] ss:$28 sps:$4 sm:$0xff]  }
 0x3e1   :  { %4753 = vmatpush3.bf16.msra.mxu1 %v5451_v24  ;;  %3925 = vmatprep.subr.bf16.mxu0 %v5454_v25  ;;  %v5527_v24 = vld [vmem:[%s7265_s7 + $0x5c0] ss:$28 sps:$4 sm:$0xff]  }
 0x3e2   :  { %4754 = vmatprep.subr.bf16.mxu1 %v5455_v26  ;;  %v5532_v25 = vld [vmem:[%s7265_s7 + $0x5fc] ss:$28 sps:$4 sm:$0xff]  }
 0x3e3   :  { %v5530_v26 = vld [vmem:[%s7265_s7 + $0x5f8] ss:$28 sps:$4 sm:$0xff]  }
 0x3e4   :  { %3926 = vmatpush1.bf16.msra.mxu0 %v5452_v27  ;;  %v5535_v27 = vld [vmem:[%s7265_s7 + $0x634] ss:$28 sps:$4 sm:$0xff]  }
 0x3e5   :  { %4755 = vmatpush3.bf16.msra.mxu1 %v5456_v28  ;;  %3927 = vmatprep.subr.bf16.mxu0 %v5459_v29  ;;  %v5533_v28 = vld [vmem:[%s7265_s7 + $0x630] ss:$28 sps:$4 sm:$0xff]  }
 0x3e6   :  { %4762 = vmatprep.subr.bf16.mxu1 %v5460_v33  ;;  %v5538_v29 = vld [vmem:[%s7265_s7 + $0x66c] ss:$28 sps:$4 sm:$0xff]  }
 0x3e7   :  { %v5536_v33 = vld [vmem:[%s7265_s7 + $0x668] ss:$28 sps:$4 sm:$0xff]  }
 0x3e8   :  { %4030 = vmatmul.mubr.bf16.vlgmr.msra.gmra.mrb[20].mxu1 %v6699_v51  ;;  %3928 = vmatpush1.bf16.msra.mxu0 %v5457_v36  ;;  %v5541_v36 = vld [vmem:[%s7265_s7 + $0x6a4] ss:$28 sps:$4 sm:$0xff]  }
 0x3e9   :  { %4763 = vmatpush3.bf16.msra.mxu1 %v5461_v37  ;;  %4070 = vmatprep.mubr.bf16.mxu1 %v6705_v54  ;;  %v5539_v37 = vld [vmem:[%s7265_s7 + $0x6a0] ss:$28 sps:$4 sm:$0xff]  }
 0x3ea   :  { %3929 = vmatprep.subr.bf16.mxu0 %v5464_v38  ;;  %4764 = vmatprep.subr.bf16.mxu1 %v5465_v39  ;;  %v5544_v38 = vld [vmem:[%s7265_s7 + $0x6dc] ss:$28 sps:$4 sm:$0xff]  }
 0x3eb   :  { %v5542_v39 = vld [vmem:[%s7265_s7 + $0x6d8] ss:$28 sps:$4 sm:$0xff]  }
 0x3ec   :  { %3930 = vmatpush1.bf16.msra.mxu0 %v5462_v40  ;;  %v7200_v40 = vld [vmem:[%s7269_s8] sm:$0x7f] }
 0x3ed   :  { %4765 = vmatpush3.bf16.msra.mxu1 %v5466_v41  ;;  %3931 = vmatprep.subr.bf16.mxu0 %v5469_v42  ;;  %v2555_v41 = vrot.slane %v7200_v40, %v6325_v31  ;;  %v2563_v42 = vrot.slane %v7200_v40, %v6328_v32 }
 0x3ee   :  { %4766 = vmatprep.subr.bf16.mxu1 %v5470_v43  ;;  %v2559_v43 = vrot.slane %v7200_v40, %v6334_v34 }
 0x3f0   :  { %3932 = vmatpush1.bf16.msra.mxu0 %v5467_v44  ;;  %v2567_v44 = vrot.slane %v7200_v40, %v6337_v35 }
 0x3f1   :  { %4767 = vmatpush3.bf16.msra.mxu1 %v5471_v45  ;;  %3933 = vmatprep.subr.bf16.mxu0 %v5474_v46 }
 0x3f2   :  { %4768 = vmatprep.subr.bf16.mxu1 %v5475_v47 }
 0x3f4   :  { %3934 = vmatpush1.bf16.msra.mxu0 %v5472_v48 }
 0x3f5   :  { %4769 = vmatpush3.bf16.msra.mxu1 %v5476_v49  ;;  %3935 = vmatprep.subr.bf16.mxu0 %v5479_v50 }
 0x3f6   :  { %4770 = vmatprep.subr.bf16.mxu1 %v5480_v55 }
 0x3f8   :  { %3936 = vmatpush1.bf16.msra.mxu0 %v5477_v56 }
 0x3f9   :  { %4771 = vmatpush3.bf16.msra.mxu1 %v5481_v57  ;;  %3937 = vmatprep.subr.bf16.mxu0 %v5484_v58 }
 0x3fa   :  { %4772 = vmatprep.subr.bf16.mxu1 %v5485_v59 }
 0x3fc   :  { %3938 = vmatpush1.bf16.msra.mxu0 %v5482_v60 }
 0x3fd   :  { %4773 = vmatpush3.bf16.msra.mxu1 %v5486_v61  ;;  %3939 = vmatprep.subr.bf16.mxu0 %v5489_v62 }
 0x3fe   :  { %4774 = vmatprep.subr.bf16.mxu1 %v5490_v63 }
 0x400   :  { %3940 = vmatpush1.bf16.msra.mxu0 %v5487_v0 }
 0x401   :  { %4775 = vmatpush3.bf16.msra.mxu1 %v5491_v1  ;;  %3941 = vmatprep.subr.bf16.mxu0 %v5494_v2 }
 0x402   :  { %4776 = vmatprep.subr.bf16.mxu1 %v5495_v3 }
 0x404   :  { %3942 = vmatpush1.bf16.msra.mxu0 %v5492_v4 }
 0x405   :  { %4777 = vmatpush3.bf16.msra.mxu1 %v5496_v5  ;;  %3954 = vmatprep.subr.bf16.mxu0 %v5499_v6 }
 0x407   :  { %3944 = vmatmul.mubr.bf16.vlgmr.msra.gmra.mrb[12].mxu0 %v6699_v51  ;;  %v5508_v51 = vld [vmem:[%s7265_s7 + $0x43c] ss:$28 sps:$4 sm:$0xff]  }
 0x408   :  { %4071 = vmatmul.mubr.bf16.vlgmr.msra.gmra.mrb[24].mxu1 %v6701_v52  ;;  %3955 = vmatpush1.bf16.msra.mxu0 %v5497_v7 }
 0x409   :  { %3986 = vmatprep.mubr.bf16.mxu0 %v6705_v54  ;;  %3956 = vmatprep.subr.bf16.mxu0 %v5502_v8  ;;  %v5506_v54 = vld [vmem:[%s7265_s7 + $0x438] ss:$28 sps:$4 sm:$0xff]  }
 0x40c   :  { %3957 = vmatpush1.bf16.msra.mxu0 %v5500_v53 }
 0x40d   :  { %3958 = vmatprep.subr.bf16.mxu0 %v5505_v9 }
 0x410   :  { %3959 = vmatpush1.bf16.msra.mxu0 %v5503_v10 }
 0x411   :  { %3960 = vmatprep.subr.bf16.mxu0 %v5508_v51 }
 0x414   :  { %3961 = vmatpush1.bf16.msra.mxu0 %v5506_v54 }
 0x415   :  { %3962 = vmatprep.subr.bf16.mxu0 %v5511_v12 }
 0x418   :  { %3963 = vmatpush1.bf16.msra.mxu0 %v5509_v13 }
 0x419   :  { %3964 = vmatprep.subr.bf16.mxu0 %v5514_v14 }
 0x41c   :  { %3965 = vmatpush1.bf16.msra.mxu0 %v5512_v15 }
 0x41d   :  { %3966 = vmatprep.subr.bf16.mxu0 %v5517_v16 }
 0x420   :  { %3967 = vmatpush1.bf16.msra.mxu0 %v5515_v17 }
 0x421   :  { %3968 = vmatprep.subr.bf16.mxu0 %v5520_v18 }
 0x424   :  { %3969 = vmatpush1.bf16.msra.mxu0 %v5518_v19 }
 0x425   :  { %3970 = vmatprep.subr.bf16.mxu0 %v5523_v20 }
 0x428   :  { %3971 = vmatpush1.bf16.msra.mxu0 %v5521_v21 }
 0x429   :  { %3972 = vmatprep.subr.bf16.mxu0 %v5526_v22 }
 0x42c   :  { %3973 = vmatpush1.bf16.msra.mxu0 %v5524_v23 }
 0x42d   :  { %3974 = vmatprep.subr.bf16.mxu0 %v5529_v11 }
 0x430   :  { %3975 = vmatpush1.bf16.msra.mxu0 %v5527_v24 }
 0x431   :  { %3976 = vmatprep.subr.bf16.mxu0 %v5532_v25 }
 0x434   :  { %3977 = vmatpush1.bf16.msra.mxu0 %v5530_v26 }
 0x435   :  { %3978 = vmatprep.subr.bf16.mxu0 %v5535_v27 }
 0x438   :  { %3979 = vmatpush1.bf16.msra.mxu0 %v5533_v28 }
 0x439   :  { %3980 = vmatprep.subr.bf16.mxu0 %v5538_v29 }
 0x43c   :  { %3981 = vmatpush1.bf16.msra.mxu0 %v5536_v33 }
 0x43d   :  { %3982 = vmatprep.subr.bf16.mxu0 %v5541_v36  ;;  %v2578_v36 = vsub.s32 6, %v6322_v30 }
 0x440   :  { %3983 = vmatpush1.bf16.msra.mxu0 %v5539_v37  ;;  %v2579_v37 = vrot.slane %v7200_v40, %v2578_v36 }
 0x441   :  { %3984 = vmatprep.subr.bf16.mxu0 %v5544_v38 }
 0x444   :  { %3985 = vmatpush1.bf16.msra.mxu0 %v5542_v39 }
 0x447   :  { %3987 = vmatmul.mubr.bf16.vlgmr.msra.gmra.mrb[12].mxu0 %v6701_v52 }
 0x49a   :  { %v3816_v45 = vpop.f32.mrb[8].mxu0  ;;  %v3902_v46 = vpop.f32.mrb[16].mxu1 }
 0x49b   :  { %v4792_v52 = vadd.f32 %v3816_v45, %v2555_v41  ;;  %v4796_v47 = vadd.f32 %v3902_v46, %v2563_v42  ;;  %v3818_v48 = vpop.f32.mrb[9].mxu0  ;;  %v3904_v49 = vpop.f32.mrb[17].mxu1 }
 0x49c   :  { %v4793_v50 = vadd.f32 %v3818_v48, %v2559_v43  ;;  %v4797_v55 = vadd.f32 %v3904_v49, %v2567_v44  ;;  %v3820_v56 = vpop.f32.mrb[10].mxu0  ;;  %v3906_v57 = vpop.f32.mrb[18].mxu1 }
 0x49d   :  { %v4682_v31 = vmul.f32 -1.442695, %v4792_v52  ;;  %v4684_v58 = vmul.f32 -1.442695, %v4796_v47  ;;  %v4794_v59 = vadd.f32 %v3820_v56, %v2555_v41  ;;  %v4798_v32 = vadd.f32 %v3906_v57, %v2563_v42  ;;  %v3822_v60 = vpop.f32.mrb[11].mxu0  ;;  %v3908_v61 = vpop.f32.mrb[19].mxu1 }
 0x49e   :  { %v4683_v34 = vmul.f32 -1.442695, %v4793_v50  ;;  %v4685_v62 = vmul.f32 -1.442695, %v4797_v55  ;;  %v4795_v63 = vadd.f32 %v3822_v60, %v2559_v43  ;;  %v4799_v35 = vadd.f32 %v3908_v61, %v2567_v44 }
 0x49f   :  { %5545 = vpow2.f32 %v4682_v31  ;;  %v4689_v0 = vmul.f32 -1.442695, %v4794_v59  ;;  %v4691_v1 = vmul.f32 -1.442695, %v4798_v32  ;;  %v2570_v59 = vsub.s32 4, %v6322_v30 }
 0x4a0   :  { %5547 = vpow2.f32 %v4684_v58  ;;  %v4690_v2 = vmul.f32 -1.442695, %v4795_v63  ;;  %v4692_v3 = vmul.f32 -1.442695, %v4799_v35  ;;  %v2574_v32 = vsub.s32 5, %v6322_v30 }
 0x4a1   :  { %5549 = vpow2.f32 %v4683_v34  ;;  %v2571_v60 = vrot.slane %v7200_v40, %v2570_v59 }
 0x4a2   :  { %5551 = vpow2.f32 %v4685_v62  ;;  %v2575_v61 = vrot.slane %v7200_v40, %v2574_v32 }
 0x4a3   :  { %5553 = vpow2.f32 %v4689_v0 }
 0x4a4   :  { %5555 = vpow2.f32 %v4691_v1 }
 0x4a5   :  { %5557 = vpow2.f32 %v4690_v2 }
 0x4a6   :  { %5559 = vpow2.f32 %v4692_v3 }
 0x4a9   :  { %v5546_v4 = vpop.eup %5545 }
 0x4aa   :  { %v5548_v5 = vpop.eup %5547  ;;  %v4121_v6 = vadd.f32 1.0, %v5546_v4 }
 0x4ab   :  { %v5550_v7 = vpop.eup %5549  ;;  %v4123_v8 = vadd.f32 1.0, %v5548_v5 }
 0x4ac   :  { %v5552_v53 = vpop.eup %5551  ;;  %5561 = vrcp.f32 %v4121_v6  ;;  %v4122_v9 = vadd.f32 1.0, %v5550_v7 }
 0x4ad   :  { %v5554_v10 = vpop.eup %5553  ;;  %5563 = vrcp.f32 %v4123_v8  ;;  %v4124_v51 = vadd.f32 1.0, %v5552_v53 }
 0x4ae   :  { %v5556_v54 = vpop.eup %5555  ;;  %5565 = vrcp.f32 %v4122_v9  ;;  %v4128_v12 = vadd.f32 1.0, %v5554_v10 }
 0x4af   :  { %v5558_v13 = vpop.eup %5557  ;;  %5567 = vrcp.f32 %v4124_v51  ;;  %v4130_v14 = vadd.f32 1.0, %v5556_v54 }
 0x4b0   :  { %v5560_v15 = vpop.eup %5559  ;;  %5569 = vrcp.f32 %v4128_v12  ;;  %v4129_v16 = vadd.f32 1.0, %v5558_v13 }
 0x4b1   :  { %5571 = vrcp.f32 %v4130_v14  ;;  %v4131_v17 = vadd.f32 1.0, %v5560_v15 }
 0x4b2   :  { %5573 = vrcp.f32 %v4129_v16 }
 0x4b3   :  { %5575 = vrcp.f32 %v4131_v17 }
 0x4b6   :  { %v5562_v18 = vpop.eup %5561 }
 0x4b7   :  { %v5564_v19 = vpop.eup %5563  ;;  %4163 = vst [vmem:[%s7270_s9] sm:$0xff] %v5562_v18 }
 0x4b8   :  { %v5566_v20 = vpop.eup %5565  ;;  %4165 = vst [vmem:[%s7270_s9 + $0x10] sm:$0xff] %v5564_v19 }
 0x4b9   :  { %v5568_v21 = vpop.eup %5567  ;;  %4164 = vst [vmem:[%s7270_s9 + $0x8] sm:$0xff] %v5566_v20 }
 0x4ba   :  { %v5570_v22 = vpop.eup %5569  ;;  %4166 = vst [vmem:[%s7270_s9 + $0x18] sm:$0xff] %v5568_v21 }
 0x4bb   :  { %v5572_v23 = vpop.eup %5571  ;;  %4170 = vst [vmem:[%s7270_s9 + $0x38] sm:$0xff] %v5570_v22  ;;  %v4756_v11 = vpop.f32.mrb[20].mxu1 }
 0x4bc   :  { %v5574_v24 = vpop.eup %5573  ;;  %4172 = vst [vmem:[%s7270_s9 + $0x48] sm:$0xff] %v5572_v23  ;;  %v4757_v25 = vpop.f32.mrb[21].mxu1 }
 0x4bd   :  { %v5576_v26 = vpop.eup %5575  ;;  %4171 = vst [vmem:[%s7270_s9 + $0x40] sm:$0xff] %v5574_v24  ;;  %v4758_v27 = vadd.f32 %v4757_v25, %v4756_v11  ;;  %v4759_v28 = vpop.f32.mrb[22].mxu1 }
 0x4be   :  { %4173 = vst [vmem:[%s7270_s9 + $0x50] sm:$0xff] %v5576_v26  ;;  %v4760_v29 = vpop.f32.mrb[23].mxu1 }
 0x4bf   :  { %v4761_v33 = vadd.f32 %v4760_v29, %v4759_v28  ;;  %v4032_v41 = vadd.f32 %v4758_v27, %v2579_v37 }
 0x4c1   :  { %v4035_v45 = vadd.f32 %v4761_v33, %v2579_v37 }
 0x4db   :  { %v4778_v38 = vpop.f32.mrb[24].mxu1 }
 0x4dc   :  { %v4779_v39 = vpop.f32.mrb[25].mxu1 }
 0x4dd   :  { %v4780_v42 = vadd.f32 %v4779_v39, %v4778_v38  ;;  %v4781_v43 = vpop.f32.mrb[26].mxu1 }
 0x4de   :  { %v4782_v44 = vpop.f32.mrb[27].mxu1 }
 0x4df   :  { %v4073_v46 = vadd.f32 %v4780_v42, %v4032_v41  ;;  %v4783_v52 = vadd.f32 %v4782_v44, %v4781_v43 }
 0x4e1   :  { %v4688_v47 = vmul.f32 -1.442695, %v4073_v46  ;;  %v4076_v48 = vadd.f32 %v4783_v52, %v4035_v45 }
 0x4e3   :  { %5577 = vpow2.f32 %v4688_v47  ;;  %v4695_v49 = vmul.f32 -1.442695, %v4076_v48 }
 0x4e5   :  { %5579 = vpow2.f32 %v4695_v49 }
 0x4ed   :  { %v5578_v50 = vpop.eup %5577 }
 0x4ee   :  { %v4127_v55 = vadd.f32 1.0, %v5578_v50 }
 0x4ef   :  { %v5580_v56 = vpop.eup %5579 }
 0x4f0   :  { %5581 = vrcp.f32 %v4127_v55  ;;  %v4134_v57 = vadd.f32 1.0, %v5580_v56 }
 0x4f2   :  { %5583 = vrcp.f32 %v4134_v57 }
 0x4fa   :  { %v5582_v31 = vpop.eup %5581 }
 0x4fb   :  { %4169 = vst.msk [vmem:[%s7270_s9 + $0x30] sm:$0xff] %vm1276_vm0, %v5582_v31 }
 0x4fc   :  { %v5584_v58 = vpop.eup %5583 }
 0x4fd   :  { %4176 = vst.msk [vmem:[%s7270_s9 + $0x68] sm:$0xff] %vm1276_vm0, %v5584_v58 }
 0x51a   :  { %v3988_v34 = vpop.f32.mrb[12].mxu0 }
 0x51b   :  { %v4800_v62 = vadd.f32 %v3988_v34, %v2571_v60  ;;  %v3990_v63 = vpop.f32.mrb[13].mxu0 }
 0x51c   :  { %v4801_v35 = vadd.f32 %v3990_v63, %v2575_v61  ;;  %v3992_v0 = vpop.f32.mrb[14].mxu0 }
 0x51d   :  { %v4686_v1 = vmul.f32 -1.442695, %v4800_v62  ;;  %v4802_v2 = vadd.f32 %v3992_v0, %v2571_v60  ;;  %v3994_v3 = vpop.f32.mrb[15].mxu0 }
 0x51e   :  { %v4687_v4 = vmul.f32 -1.442695, %v4801_v35  ;;  %v4803_v5 = vadd.f32 %v3994_v3, %v2575_v61 }
 0x51f   :  { %5585 = vpow2.f32 %v4686_v1  ;;  %v4693_v6 = vmul.f32 -1.442695, %v4802_v2 }
 0x520   :  { %5587 = vpow2.f32 %v4687_v4  ;;  %v4694_v7 = vmul.f32 -1.442695, %v4803_v5 }
 0x521   :  { %5589 = vpow2.f32 %v4693_v6 }
 0x522   :  { %5591 = vpow2.f32 %v4694_v7 }
 0x529   :  { %v5586_v30 = vpop.eup %5585 }
 0x52a   :  { %v5588_v8 = vpop.eup %5587  ;;  %v4125_v53 = vadd.f32 1.0, %v5586_v30 }
 0x52b   :  { %v5590_v40 = vpop.eup %5589  ;;  %v4126_v9 = vadd.f32 1.0, %v5588_v8 }
 0x52c   :  { %v5592_v10 = vpop.eup %5591  ;;  %5593 = vrcp.f32 %v4125_v53  ;;  %v4132_v51 = vadd.f32 1.0, %v5590_v40 }
 0x52d   :  { %5595 = vrcp.f32 %v4126_v9  ;;  %v4133_v54 = vadd.f32 1.0, %v5592_v10 }
 0x52e   :  { %5597 = vrcp.f32 %v4132_v51 }
 0x52f   :  { %5599 = vrcp.f32 %v4133_v54 }
 0x536   :  { %v5594_v12 = vpop.eup %5593 }
 0x537   :  { %v5596_v13 = vpop.eup %5595  ;;  %4167 = vst [vmem:[%s7270_s9 + $0x20] sm:$0xff] %v5594_v12 }
 0x538   :  { %v5598_v14 = vpop.eup %5597  ;;  %4168 = vst [vmem:[%s7270_s9 + $0x28] sm:$0xff] %v5596_v13 }
 0x539   :  { %v5600_v15 = vpop.eup %5599  ;;  %4174 = vst [vmem:[%s7270_s9 + $0x58] sm:$0xff] %v5598_v14 }
 0x53a   :  { %4175 = vst [vmem:[%s7270_s9 + $0x60] sm:$0xff] %v5600_v15 }

</bundles_post_ra>
